<compile_context>
chip_gen: v7x
topology: tpu7x:2x2x1
jax: 0.10.0
libtpu: 0.0.40
codegen_flags: <defaults>
</compile_context>

<pallas_src>
import numpy as np
import jax
import jax.numpy as jnp
from jax import lax
from jax.experimental import pallas as pl
from jax.experimental.pallas import tpu as pltpu

INITIAL_SIGMA = 0.5
SCALE_FACTOR = 64.0
BN_EPS = 1e-5


# ------------------------------ Pallas kernel ------------------------------

def _make_fused_kernel(wp, block_batch, identity_shortcut, compute_dtype):
    # flat-lane shift of each 3x3 tap inside the (H+2, W+2)-padded layout
    shifts = [(ky - 1) * wp + (kx - 1) for ky in range(3) for kx in range(3)]

    def conv3x3(w, act_c):
        # act_c: (C, L_pad) compute_dtype; w: (Cout, 9*C) compute_dtype.
        # One MXU matmul with K = 9*C (taps stacked along the contraction dim).
        lanes = act_c.shape[1]
        taps = [act_c if d == 0
                else pltpu.roll(act_c, shift=(-d) % lanes, axis=1)
                for d in shifts]
        act9 = jnp.concatenate(taps, axis=0)                   # (9*C, L_pad)
        return jnp.dot(w, act9, preferred_element_type=jnp.float32)

    def kernel(*refs):
        if identity_shortcut:
            (x_ref, w1_ref, w2_ref, s1_ref, b1_ref, b2_ref, m_ref, o_ref) = refs
            wsc = None
        else:
            (x_ref, w1_ref, w2_ref, wsc_ref, s1_ref, b1_ref, b2_ref,
             m_ref, o_ref) = refs
            wsc = wsc_ref[...]                                 # (Cout, Cin)

        cin, lpad = x_ref.shape[1], x_ref.shape[2]
        neg = jnp.float32(-1e30)

        # loop-invariant broadcasts, hoisted out of the per-sample loop
        mask = m_ref[...] > 0.0                                # (1, L_pad)
        s1b = jnp.broadcast_to(s1_ref[...], (cin, lpad))       # bn1 scale
        b1m = jnp.where(mask, b1_ref[...], neg)                # (Cin, L_pad)
        b2m = jnp.where(mask, b2_ref[...], neg)                # (Cout, L_pad)

        # block_batch is small and static; switch to lax.fori_loop(unroll=True)
        # if it is ever raised above ~4 (vreg-pressure / spills).
        for b in range(block_batch):
            xb = x_ref[b]                                      # (Cin, L_pad) f32
            # bn1 + relu; padding ring / lane tail forced to 0 by the masked
            # bias (xb is zero there). Single cast to the MXU dtype.
            act1 = jnp.maximum(xb * s1b + b1m, 0.0).astype(compute_dtype)
            # hyper-conv1 (bn2 scale pre-folded into w1): one K=9*Cin matmul
            mid = conv3x3(w1_ref[b], act1)                     # (Cout, L_pad) f32
            # bn2 bias + relu; ring/tail re-zeroed by the masked bias
            mid = jnp.maximum(mid + b2m, 0.0).astype(compute_dtype)
            # hyper-conv2: one K=9*Cout matmul
            out = conv3x3(w2_ref[b], mid)                      # (Cout, L_pad) f32
            # shortcut on raw x + residual add (f32)
            if identity_shortcut:
                out = out + xb
            else:
                out = out + jnp.dot(wsc, xb.astype(compute_dtype),
                                    preferred_element_type=jnp.float32)
            o_ref[b] = out.astype(o_ref.dtype)

    return kernel


# ------------------------------ parameter prep ------------------------------

def _perm_ock_to_okc(cout, cin):
    """Row permutation mapping flat (o, c, ky, kx) order to (o, ky, kx, c)."""
    idx = np.arange(cout * cin * 9).reshape(cout, cin, 9)
    return np.transpose(idx, (0, 2, 1)).reshape(-1)


def prepare_block_params(params, in_planes, out_planes, stride=1,
                         compute_dtype=jnp.bfloat16):
    """One-time prep: permute hypernet rows to the fused (Cout, 9*C) layout,
    fold bn2's scale into hyperconv1, pre-cast the 1x1 shortcut weight."""
    cin, cout = in_planes, out_planes
    perm1 = _perm_ock_to_okc(cout, cin)
    perm2 = _perm_ock_to_okc(cout, cout)
    row_scale1 = jnp.repeat(params["bn2_scale"], 9 * cin)      # (Cout*9*Cin,)

    hc1_w = params["hc1_w"][perm1] * row_scale1[:, None]
    hc1_b = params["hc1_b"][perm1] * row_scale1
    hc2_w = params["hc2_w"][perm2]
    hc2_b = params["hc2_b"][perm2]

    # explicit flag, matching the module: Identity iff stride==1 and Cin==Cout
    identity_shortcut = (stride == 1 and cin == cout)
    wsc = None if identity_shortcut else params["wsc"].astype(compute_dtype)

    return dict(
        in_planes=cin, out_planes=cout, stride=stride,
        identity_shortcut=identity_shortcut, compute_dtype=compute_dtype,
        bn1_scale=params["bn1_scale"].reshape(cin, 1).astype(jnp.float32),
        bn1_bias=params["bn1_bias"].reshape(cin, 1).astype(jnp.float32),
        bn2_bias=params["bn2_bias"].reshape(cout, 1).astype(jnp.float32),
        hc1_w=hc1_w, hc1_b=hc1_b, hc2_w=hc2_w, hc2_b=hc2_b,
        wsc=wsc, raw=params)


# ------------------------------ wrapper ------------------------------

def wide_hyper_basic_block_forward(x, h_in, prepped, *, block_batch=2):
    """Eval-mode forward of WideHyperBasicBlock (dropout = identity)."""
    stride = prepped["stride"]
    if stride != 1:
        # TODO(synk): strided hyper-conv1 is not fused into the Pallas kernel;
        # fall back to the plain-JAX path for stride != 1.
        return reference_forward(x, h_in, prepped["raw"], stride)

    compute_dtype = prepped["compute_dtype"]
    identity_shortcut = prepped["identity_shortcut"]
    N, Cin, H, W = x.shape
    Cout = prepped["out_planes"]
    assert Cin == prepped["in_planes"]
    Hp, Wp = H + 2, W + 2
    L = Hp * Wp
    L_pad = ((L + 127) // 128) * 128                 # lane-dense stores

    # eval-mode h transform (matches the PyTorch eval branch)
    h = (h_in > 1e-4).astype(jnp.float32) * INITIAL_SIGMA + h_in / SCALE_FACTOR

    # hyper-network weight generation (tiny Linear layers, plain-JAX glue);
    # rows are pre-permuted so this directly yields the fused (Cout, 9*C)
    # layout with bn2's scale already folded in; cast to the MXU dtype
    # immediately after the matmul.
    w1 = (h @ prepped["hc1_w"].T + prepped["hc1_b"]).astype(compute_dtype)
    w1 = w1.reshape(N, Cout, 9 * Cin)
    w2 = (h @ prepped["hc2_w"].T + prepped["hc2_b"]).astype(compute_dtype)
    w2 = w2.reshape(N, Cout, 9 * Cout)

    # zero-padded, flattened-spatial activation: (N, Cin, L_pad)
    xp = jnp.pad(x, ((0, 0), (0, 0), (1, 1), (1, 1))).reshape(N, Cin, L)
    xp = jnp.pad(xp, ((0, 0), (0, 0), (0, L_pad - L))).astype(jnp.float32)

    # mask of valid (interior) pixels in that layout
    mask = jnp.zeros((Hp, Wp), jnp.float32).at[1:H + 1, 1:W + 1].set(1.0)
    mask = jnp.pad(mask.reshape(1, L), ((0, 0), (0, L_pad - L)))

    # batch tiling: >= 2 grid steps whenever N >= 2 (keeps both v7x TCs busy)
    bb = max(1, min(block_batch, N))
    if N >= 2:
        bb = min(bb, (N + 1) // 2)
    Npad = ((N + bb - 1) // bb) * bb
    if Npad != N:
        pad = Npad - N
        xp = jnp.pad(xp, ((0, pad), (0, 0), (0, 0)))
        w1 = jnp.pad(w1, ((0, pad), (0, 0), (0, 0)))
        w2 = jnp.pad(w2, ((0, pad), (0, 0), (0, 0)))

    kernel = _make_fused_kernel(Wp, bb, identity_shortcut, compute_dtype)

    in_specs = [
        pl.BlockSpec((bb, Cin, L_pad), lambda i: (i, 0, 0)),       # x (padded)
        pl.BlockSpec((bb, Cout, 9 * Cin), lambda i: (i, 0, 0)),    # fused w1
        pl.BlockSpec((bb, Cout, 9 * Cout), lambda i: (i, 0, 0)),   # fused w2
    ]
    inputs = [xp, w1, w2]
    if not identity_shortcut:
        in_specs.append(pl.BlockSpec((Cout, Cin), lambda i: (0, 0)))  # wsc
        inputs.append(prepped["wsc"])
    in_specs += [
        pl.BlockSpec((Cin, 1), lambda i: (0, 0)),     # bn1 scale (folded)
        pl.BlockSpec((Cin, 1), lambda i: (0, 0)),     # bn1 bias  (folded)
        pl.BlockSpec((Cout, 1), lambda i: (0, 0)),    # bn2 bias  (folded)
        pl.BlockSpec((1, L_pad), lambda i: (0, 0)),   # interior-pixel mask
    ]
    inputs += [prepped["bn1_scale"], prepped["bn1_bias"],
               prepped["bn2_bias"], mask]

    wbytes = jnp.dtype(compute_dtype).itemsize
    flops_per_sample = 2 * 9 * (Cout * Cin + Cout * Cout) * L_pad
    if not identity_shortcut:
        flops_per_sample += 2 * Cout * Cin * L_pad
    cost = pl.CostEstimate(
        flops=int(Npad * flops_per_sample),
        transcendentals=0,
        bytes_accessed=int(Npad * (Cin * L_pad * 4
                                   + 9 * Cout * (Cin + Cout) * wbytes
                                   + Cout * L_pad * 4)))

    out = pl.pallas_call(
        kernel,
        out_shape=jax.ShapeDtypeStruct((Npad, Cout, L_pad), jnp.float32),
        grid=(Npad // bb,),
        in_specs=in_specs,
        out_specs=pl.BlockSpec((bb, Cout, L_pad), lambda i: (i, 0, 0)),
        compiler_params=pltpu.CompilerParams(
            dimension_semantics=("parallel",),
            vmem_limit_bytes=64 * 1024 * 1024),
        cost_estimate=cost,
    )(*inputs)

    # crop back to NCHW: drop lane tail, padding ring, batch padding
    out = out[:N, :, :L].reshape(N, Cout, Hp, Wp)[:, :, 1:H + 1, 1:W + 1]
    return out


# ------------------------------ pure-JAX reference ------------------------------

def reference_forward(x, h_in, params, stride):
    N, Cin, H, W = x.shape
    Cout = params["bn2_scale"].shape[0]
    dn = ("NCHW", "OIHW", "NCHW")
    prec = lax.Precision.HIGHEST
    h = (h_in > 1e-4).astype(jnp.float32) * INITIAL_SIGMA + h_in / SCALE_FACTOR

    a = jnp.maximum(x * params["bn1_scale"][None, :, None, None]
                    + params["bn1_bias"][None, :, None, None], 0.0)
    w1 = (h @ params["hc1_w"].T + params["hc1_b"]).reshape(N, Cout, Cin, 3, 3)
    mid = jnp.concatenate(
        [lax.conv_general_dilated(a[i:i + 1], w1[i], (stride, stride),
                                  [(1, 1), (1, 1)], dimension_numbers=dn,
                                  precision=prec)
         for i in range(N)], axis=0)
    mid = jnp.maximum(mid * params["bn2_scale"][None, :, None, None]
                      + params["bn2_bias"][None, :, None, None], 0.0)
    w2 = (h @ params["hc2_w"].T + params["hc2_b"]).reshape(N, Cout, Cout, 3, 3)
    out = jnp.concatenate(
        [lax.conv_general_dilated(mid[i:i + 1], w2[i], (1, 1),
                                  [(1, 1), (1, 1)], dimension_numbers=dn,
                                  precision=prec)
         for i in range(N)], axis=0)
    sc = lax.conv_general_dilated(x, params["wsc"][:, :, None, None],
                                  (stride, stride), [(0, 0), (0, 0)],
                                  dimension_numbers=dn, precision=prec)
    return out + sc


# ------------------------------ test setup ------------------------------

def make_params(key, Cin, Cout, hyper_depth):
    ks = jax.random.split(key, 13)
    hc1_w = 0.05 * jax.random.normal(ks[0], (Cout * Cin * 9, hyper_depth), jnp.float32)
    hc1_b = 0.05 * jax.random.normal(ks[1], (Cout * Cin * 9,), jnp.float32)
    hc2_w = 0.05 * jax.random.normal(ks[2], (Cout * Cout * 9, hyper_depth), jnp.float32)
    hc2_b = 0.05 * jax.random.normal(ks[3], (Cout * Cout * 9,), jnp.float32)

    g1 = 1.0 + 0.1 * jax.random.normal(ks[4], (Cin,), jnp.float32)
    be1 = 0.1 * jax.random.normal(ks[5], (Cin,), jnp.float32)
    m1 = 0.1 * jax.random.normal(ks[6], (Cin,), jnp.float32)
    v1 = 1.0 + 0.1 * jax.random.uniform(ks[7], (Cin,), dtype=jnp.float32)
    g2 = 1.0 + 0.1 * jax.random.normal(ks[8], (Cout,), jnp.float32)
    be2 = 0.1 * jax.random.normal(ks[9], (Cout,), jnp.float32)
    m2 = 0.1 * jax.random.normal(ks[10], (Cout,), jnp.float32)
    v2 = 1.0 + 0.1 * jax.random.uniform(ks[11], (Cout,), dtype=jnp.float32)

    bn1_scale = g1 / jnp.sqrt(v1 + BN_EPS)
    bn1_bias = be1 - m1 * bn1_scale
    bn2_scale = g2 / jnp.sqrt(v2 + BN_EPS)
    bn2_bias = be2 - m2 * bn2_scale

    if Cin != Cout:
        wsc = 0.1 * jax.random.normal(ks[12], (Cout, Cin), jnp.float32)
    else:
        wsc = jnp.eye(Cout, dtype=jnp.float32)   # identity shortcut (reference)

    return dict(bn1_scale=bn1_scale, bn1_bias=bn1_bias,
                bn2_scale=bn2_scale, bn2_bias=bn2_bias,
                hc1_w=hc1_w, hc1_b=hc1_b, hc2_w=hc2_w, hc2_b=hc2_b, wsc=wsc)


if __name__ == "__main__":
    key = jax.random.PRNGKey(0)
    k_pa, k_pb, k_x1, k_h1, k_x2, k_h2 = jax.random.split(key, 6)

    # ---- config A: projection shortcut (Cin != Cout), stride 1 ----
    N, Cin, Cout, H, W, hd, stride = 4, 8, 16, 16, 16, 1, 1
    x = jax.random.normal(k_x1, (N, Cin, H, W), jnp.float32)
    h_in = jax.random.uniform(k_h1, (N, hd), dtype=jnp.float32)
    params = make_params(k_pa, Cin, Cout, hd)

    ref = jax.block_until_ready(reference_forward(x, h_in, params, stride))

    # f32 MXU-operand path — tight tolerance
    prepped_f32 = prepare_block_params(params, Cin, Cout, stride,
                                       compute_dtype=jnp.float32)
    out_f32 = jax.block_until_ready(
        wide_hyper_basic_block_forward(x, h_in, prepped_f32))
    np.testing.assert_allclose(np.asarray(out_f32), np.asarray(ref),
                               rtol=2e-3, atol=2e-3)

    # default bf16 MXU-operand path (f32 accumulation) — looser tolerance
    prepped_bf16 = prepare_block_params(params, Cin, Cout, stride,
                                        compute_dtype=jnp.bfloat16)
    out_bf16 = jax.block_until_ready(
        wide_hyper_basic_block_forward(x, h_in, prepped_bf16))
    np.testing.assert_allclose(np.asarray(out_bf16), np.asarray(ref),
                               rtol=5e-2, atol=5e-2)

    # ---- config B: identity shortcut (Cin == Cout), stride 1, N=2 ----
    N2, C2, H2, W2 = 2, 16, 16, 16
    x2 = jax.random.normal(k_x2, (N2, C2, H2, W2), jnp.float32)
    h2 = jax.random.uniform(k_h2, (N2, hd), dtype=jnp.float32)
    params2 = make_params(k_pb, C2, C2, hd)
    ref2 = jax.block_until_ready(reference_forward(x2, h2, params2, 1))
    prepped2 = prepare_block_params(params2, C2, C2, 1,
                                    compute_dtype=jnp.float32)
    out2 = jax.block_until_ready(
        wide_hyper_basic_block_forward(x2, h2, prepped2))
    np.testing.assert_allclose(np.asarray(out2), np.asarray(ref2),
                               rtol=2e-3, atol=2e-3)

    print("KERNEL_OK")
</pallas_src>

<mosaic_0001>
module attributes {stable_mosaic.version = 11 : i64} {
  func.func @kernel(%arg0: i32, %arg1: memref<2x8x384xf32, #tpu.memory_space<vmem>>, %arg2: memref<2x16x72xf32, #tpu.memory_space<vmem>>, %arg3: memref<2x16x144xf32, #tpu.memory_space<vmem>>, %arg4: memref<16x8xf32, #tpu.memory_space<vmem>>, %arg5: memref<8x1xf32, #tpu.memory_space<vmem>>, %arg6: memref<8x1xf32, #tpu.memory_space<vmem>>, %arg7: memref<16x1xf32, #tpu.memory_space<vmem>>, %arg8: memref<1x384xf32, #tpu.memory_space<vmem>>, %arg9: memref<2x16x384xf32, #tpu.memory_space<vmem>>) attributes {dimension_semantics = [#tpu.dimension_semantics<parallel>], iteration_bounds = array<i64: 2>, scalar_prefetch = 0 : i64, scratch_operands = 0 : i64, tpu.core_type = #tpu.core_type<tc>, window_params = [{transform_indices = @transform_0, window_bounds = array<i64: 2, 8, 384>}, {transform_indices = @transform_1, window_bounds = array<i64: 2, 16, 72>}, {transform_indices = @transform_2, window_bounds = array<i64: 2, 16, 144>}, {pipeline_mode = #tpu.pipeline_mode<synchronous>, transform_indices = @transform_3, window_bounds = array<i64: 16, 8>}, {pipeline_mode = #tpu.pipeline_mode<synchronous>, transform_indices = @transform_4, window_bounds = array<i64: 8, 1>}, {pipeline_mode = #tpu.pipeline_mode<synchronous>, transform_indices = @transform_5, window_bounds = array<i64: 8, 1>}, {pipeline_mode = #tpu.pipeline_mode<synchronous>, transform_indices = @transform_6, window_bounds = array<i64: 16, 1>}, {pipeline_mode = #tpu.pipeline_mode<synchronous>, transform_indices = @transform_7, window_bounds = array<i64: 1, 384>}, {transform_indices = @transform_8, window_bounds = array<i64: 2, 16, 384>}]} {
    %c0 = arith.constant 0 : index
    %c0_0 = arith.constant 0 : index
    %0 = vector.load %arg4[%c0, %c0_0] : memref<16x8xf32, #tpu.memory_space<vmem>>, vector<16x8xf32>
    %c0_1 = arith.constant 0 : index
    %c0_2 = arith.constant 0 : index
    %1 = vector.load %arg8[%c0_1, %c0_2] : memref<1x384xf32, #tpu.memory_space<vmem>>, vector<1x384xf32>
    %cst = arith.constant 0.000000e+00 : f32
    %2 = vector.broadcast %cst : f32 to vector<1x384xf32>
    %3 = arith.cmpf ogt, %1, %2 : vector<1x384xf32>
    %c0_3 = arith.constant 0 : index
    %c0_4 = arith.constant 0 : index
    %4 = vector.load %arg5[%c0_3, %c0_4] : memref<8x1xf32, #tpu.memory_space<vmem>>, vector<8x1xf32>
    %5 = vector.shape_cast %4 : vector<8x1xf32> to vector<8x1xf32>
    %6 = vector.broadcast %5 : vector<8x1xf32> to vector<8x384xf32>
    %c0_5 = arith.constant 0 : index
    %c0_6 = arith.constant 0 : index
    %7 = vector.load %arg6[%c0_5, %c0_6] : memref<8x1xf32, #tpu.memory_space<vmem>>, vector<8x1xf32>
    %cst_7 = arith.constant -1.000000e+30 : f32
    %8 = vector.shape_cast %3 : vector<1x384xi1> to vector<1x384xi1>
    %9 = vector.broadcast %8 : vector<1x384xi1> to vector<8x384xi1>
    %10 = vector.shape_cast %7 : vector<8x1xf32> to vector<8x1xf32>
    %11 = vector.broadcast %10 : vector<8x1xf32> to vector<8x384xf32>
    %12 = vector.broadcast %cst_7 : f32 to vector<8x384xf32>
    %13 = arith.select %9, %11, %12 : vector<8x384xi1>, vector<8x384xf32>
    %c0_8 = arith.constant 0 : index
    %c0_9 = arith.constant 0 : index
    %14 = vector.load %arg7[%c0_8, %c0_9] : memref<16x1xf32, #tpu.memory_space<vmem>>, vector<16x1xf32>
    %cst_10 = arith.constant -1.000000e+30 : f32
    %15 = vector.shape_cast %3 : vector<1x384xi1> to vector<1x384xi1>
    %16 = vector.broadcast %15 : vector<1x384xi1> to vector<16x384xi1>
    %17 = vector.shape_cast %14 : vector<16x1xf32> to vector<16x1xf32>
    %18 = vector.broadcast %17 : vector<16x1xf32> to vector<16x384xf32>
    %19 = vector.broadcast %cst_10 : f32 to vector<16x384xf32>
    %20 = arith.select %16, %18, %19 : vector<16x384xi1>, vector<16x384xf32>
    %c0_11 = arith.constant 0 : index
    %c0_12 = arith.constant 0 : index
    %c0_13 = arith.constant 0 : index
    %21 = vector.load %arg1[%c0_11, %c0_12, %c0_13] : memref<2x8x384xf32, #tpu.memory_space<vmem>>, vector<1x8x384xf32>
    %22 = vector.shape_cast %21 : vector<1x8x384xf32> to vector<8x384xf32>
    %23 = arith.mulf %22, %6 : vector<8x384xf32>
    %24 = arith.addf %23, %13 : vector<8x384xf32>
    %cst_14 = arith.constant 0.000000e+00 : f32
    %25 = vector.broadcast %cst_14 : f32 to vector<8x384xf32>
    %26 = arith.maximumf %24, %25 : vector<8x384xf32>
    %c0_15 = arith.constant 0 : index
    %c0_16 = arith.constant 0 : index
    %c0_17 = arith.constant 0 : index
    %27 = vector.load %arg2[%c0_15, %c0_16, %c0_17] : memref<2x16x72xf32, #tpu.memory_space<vmem>>, vector<1x16x72xf32>
    %28 = vector.shape_cast %27 : vector<1x16x72xf32> to vector<16x72xf32>
    %c19_i32 = arith.constant 19 : i32
    %29 = tpu.dynamic_rotate %26 by %c19_i32 dim 1 : vector<8x384xf32>, i32 -> vector<8x384xf32>
    %c18_i32 = arith.constant 18 : i32
    %30 = tpu.dynamic_rotate %26 by %c18_i32 dim 1 : vector<8x384xf32>, i32 -> vector<8x384xf32>
    %c17_i32 = arith.constant 17 : i32
    %31 = tpu.dynamic_rotate %26 by %c17_i32 dim 1 : vector<8x384xf32>, i32 -> vector<8x384xf32>
    %c1_i32 = arith.constant 1 : i32
    %32 = tpu.dynamic_rotate %26 by %c1_i32 dim 1 : vector<8x384xf32>, i32 -> vector<8x384xf32>
    %c383_i32 = arith.constant 383 : i32
    %33 = tpu.dynamic_rotate %26 by %c383_i32 dim 1 : vector<8x384xf32>, i32 -> vector<8x384xf32>
    %c367_i32 = arith.constant 367 : i32
    %34 = tpu.dynamic_rotate %26 by %c367_i32 dim 1 : vector<8x384xf32>, i32 -> vector<8x384xf32>
    %c366_i32 = arith.constant 366 : i32
    %35 = tpu.dynamic_rotate %26 by %c366_i32 dim 1 : vector<8x384xf32>, i32 -> vector<8x384xf32>
    %c365_i32 = arith.constant 365 : i32
    %36 = tpu.dynamic_rotate %26 by %c365_i32 dim 1 : vector<8x384xf32>, i32 -> vector<8x384xf32>
    %37 = tpu.concatenate %29, %30, %31, %32, %26, %33, %34, %35, %36 in 0 : vector<8x384xf32>, vector<8x384xf32>, vector<8x384xf32>, vector<8x384xf32>, vector<8x384xf32>, vector<8x384xf32>, vector<8x384xf32>, vector<8x384xf32>, vector<8x384xf32> -> vector<72x384xf32>
    %cst_18 = arith.constant dense<0.000000e+00> : vector<16x384xf32>
    %38 = tpu.matmul %28, %37, %cst_18 {dimension_numbers = #tpu.dot_dimension_numbers<[1], [0], [0], [1], [0, 0, 1, 1], [], []>} : vector<16x72xf32>, vector<72x384xf32>, vector<16x384xf32> -> vector<16x384xf32>
    %39 = arith.addf %38, %20 : vector<16x384xf32>
    %cst_19 = arith.constant 0.000000e+00 : f32
    %40 = vector.broadcast %cst_19 : f32 to vector<16x384xf32>
    %41 = arith.maximumf %39, %40 : vector<16x384xf32>
    %c0_20 = arith.constant 0 : index
    %c0_21 = arith.constant 0 : index
    %c0_22 = arith.constant 0 : index
    %42 = vector.load %arg3[%c0_20, %c0_21, %c0_22] : memref<2x16x144xf32, #tpu.memory_space<vmem>>, vector<1x16x144xf32>
    %43 = vector.shape_cast %42 : vector<1x16x144xf32> to vector<16x144xf32>
    %c19_i32_23 = arith.constant 19 : i32
    %44 = tpu.dynamic_rotate %41 by %c19_i32_23 dim 1 : vector<16x384xf32>, i32 -> vector<16x384xf32>
    %c18_i32_24 = arith.constant 18 : i32
    %45 = tpu.dynamic_rotate %41 by %c18_i32_24 dim 1 : vector<16x384xf32>, i32 -> vector<16x384xf32>
    %c17_i32_25 = arith.constant 17 : i32
    %46 = tpu.dynamic_rotate %41 by %c17_i32_25 dim 1 : vector<16x384xf32>, i32 -> vector<16x384xf32>
    %c1_i32_26 = arith.constant 1 : i32
    %47 = tpu.dynamic_rotate %41 by %c1_i32_26 dim 1 : vector<16x384xf32>, i32 -> vector<16x384xf32>
    %c383_i32_27 = arith.constant 383 : i32
    %48 = tpu.dynamic_rotate %41 by %c383_i32_27 dim 1 : vector<16x384xf32>, i32 -> vector<16x384xf32>
    %c367_i32_28 = arith.constant 367 : i32
    %49 = tpu.dynamic_rotate %41 by %c367_i32_28 dim 1 : vector<16x384xf32>, i32 -> vector<16x384xf32>
    %c366_i32_29 = arith.constant 366 : i32
    %50 = tpu.dynamic_rotate %41 by %c366_i32_29 dim 1 : vector<16x384xf32>, i32 -> vector<16x384xf32>
    %c365_i32_30 = arith.constant 365 : i32
    %51 = tpu.dynamic_rotate %41 by %c365_i32_30 dim 1 : vector<16x384xf32>, i32 -> vector<16x384xf32>
    %52 = tpu.concatenate %44, %45, %46, %47, %41, %48, %49, %50, %51 in 0 : vector<16x384xf32>, vector<16x384xf32>, vector<16x384xf32>, vector<16x384xf32>, vector<16x384xf32>, vector<16x384xf32>, vector<16x384xf32>, vector<16x384xf32>, vector<16x384xf32> -> vector<144x384xf32>
    %cst_31 = arith.constant dense<0.000000e+00> : vector<16x384xf32>
    %53 = tpu.matmul %43, %52, %cst_31 {dimension_numbers = #tpu.dot_dimension_numbers<[1], [0], [0], [1], [0, 0, 1, 1], [], []>} : vector<16x144xf32>, vector<144x384xf32>, vector<16x384xf32> -> vector<16x384xf32>
    %cst_32 = arith.constant dense<0.000000e+00> : vector<16x384xf32>
    %54 = tpu.matmul %0, %22, %cst_32 {dimension_numbers = #tpu.dot_dimension_numbers<[1], [0], [0], [1], [0, 0, 1, 1], [], []>} : vector<16x8xf32>, vector<8x384xf32>, vector<16x384xf32> -> vector<16x384xf32>
    %55 = arith.addf %53, %54 : vector<16x384xf32>
    %c0_33 = arith.constant 0 : index
    %c0_34 = arith.constant 0 : index
    %c0_35 = arith.constant 0 : index
    %56 = vector.load %arg9[%c0_33, %c0_34, %c0_35] : memref<2x16x384xf32, #tpu.memory_space<vmem>>, vector<1x16x384xf32>
    %57 = vector.shape_cast %56 : vector<1x16x384xf32> to vector<16x384xf32>
    %58 = vector.shape_cast %55 : vector<16x384xf32> to vector<1x16x384xf32>
    tpu.vector_store %arg9[%c0_33, %c0_34, %c0_35], %58 {strides = array<i32>} : memref<2x16x384xf32, #tpu.memory_space<vmem>>, vector<1x16x384xf32>,
    %c1 = arith.constant 1 : index
    %c0_36 = arith.constant 0 : index
    %c0_37 = arith.constant 0 : index
    %59 = vector.load %arg1[%c1, %c0_36, %c0_37] : memref<2x8x384xf32, #tpu.memory_space<vmem>>, vector<1x8x384xf32>
    %60 = vector.shape_cast %59 : vector<1x8x384xf32> to vector<8x384xf32>
    %61 = arith.mulf %60, %6 : vector<8x384xf32>
    %62 = arith.addf %61, %13 : vector<8x384xf32>
    %cst_38 = arith.constant 0.000000e+00 : f32
    %63 = vector.broadcast %cst_38 : f32 to vector<8x384xf32>
    %64 = arith.maximumf %62, %63 : vector<8x384xf32>
    %c1_39 = arith.constant 1 : index
    %c0_40 = arith.constant 0 : index
    %c0_41 = arith.constant 0 : index
    %65 = vector.load %arg2[%c1_39, %c0_40, %c0_41] : memref<2x16x72xf32, #tpu.memory_space<vmem>>, vector<1x16x72xf32>
    %66 = vector.shape_cast %65 : vector<1x16x72xf32> to vector<16x72xf32>
    %c19_i32_42 = arith.constant 19 : i32
    %67 = tpu.dynamic_rotate %64 by %c19_i32_42 dim 1 : vector<8x384xf32>, i32 -> vector<8x384xf32>
    %c18_i32_43 = arith.constant 18 : i32
    %68 = tpu.dynamic_rotate %64 by %c18_i32_43 dim 1 : vector<8x384xf32>, i32 -> vector<8x384xf32>
    %c17_i32_44 = arith.constant 17 : i32
    %69 = tpu.dynamic_rotate %64 by %c17_i32_44 dim 1 : vector<8x384xf32>, i32 -> vector<8x384xf32>
    %c1_i32_45 = arith.constant 1 : i32
    %70 = tpu.dynamic_rotate %64 by %c1_i32_45 dim 1 : vector<8x384xf32>, i32 -> vector<8x384xf32>
    %c383_i32_46 = arith.constant 383 : i32
    %71 = tpu.dynamic_rotate %64 by %c383_i32_46 dim 1 : vector<8x384xf32>, i32 -> vector<8x384xf32>
    %c367_i32_47 = arith.constant 367 : i32
    %72 = tpu.dynamic_rotate %64 by %c367_i32_47 dim 1 : vector<8x384xf32>, i32 -> vector<8x384xf32>
    %c366_i32_48 = arith.constant 366 : i32
    %73 = tpu.dynamic_rotate %64 by %c366_i32_48 dim 1 : vector<8x384xf32>, i32 -> vector<8x384xf32>
    %c365_i32_49 = arith.constant 365 : i32
    %74 = tpu.dynamic_rotate %64 by %c365_i32_49 dim 1 : vector<8x384xf32>, i32 -> vector<8x384xf32>
    %75 = tpu.concatenate %67, %68, %69, %70, %64, %71, %72, %73, %74 in 0 : vector<8x384xf32>, vector<8x384xf32>, vector<8x384xf32>, vector<8x384xf32>, vector<8x384xf32>, vector<8x384xf32>, vector<8x384xf32>, vector<8x384xf32>, vector<8x384xf32> -> vector<72x384xf32>
    %cst_50 = arith.constant dense<0.000000e+00> : vector<16x384xf32>
    %76 = tpu.matmul %66, %75, %cst_50 {dimension_numbers = #tpu.dot_dimension_numbers<[1], [0], [0], [1], [0, 0, 1, 1], [], []>} : vector<16x72xf32>, vector<72x384xf32>, vector<16x384xf32> -> vector<16x384xf32>
    %77 = arith.addf %76, %20 : vector<16x384xf32>
    %cst_51 = arith.constant 0.000000e+00 : f32
    %78 = vector.broadcast %cst_51 : f32 to vector<16x384xf32>
    %79 = arith.maximumf %77, %78 : vector<16x384xf32>
    %c1_52 = arith.constant 1 : index
    %c0_53 = arith.constant 0 : index
    %c0_54 = arith.constant 0 : index
    %80 = vector.load %arg3[%c1_52, %c0_53, %c0_54] : memref<2x16x144xf32, #tpu.memory_space<vmem>>, vector<1x16x144xf32>
    %81 = vector.shape_cast %80 : vector<1x16x144xf32> to vector<16x144xf32>
    %c19_i32_55 = arith.constant 19 : i32
    %82 = tpu.dynamic_rotate %79 by %c19_i32_55 dim 1 : vector<16x384xf32>, i32 -> vector<16x384xf32>
    %c18_i32_56 = arith.constant 18 : i32
    %83 = tpu.dynamic_rotate %79 by %c18_i32_56 dim 1 : vector<16x384xf32>, i32 -> vector<16x384xf32>
    %c17_i32_57 = arith.constant 17 : i32
    %84 = tpu.dynamic_rotate %79 by %c17_i32_57 dim 1 : vector<16x384xf32>, i32 -> vector<16x384xf32>
    %c1_i32_58 = arith.constant 1 : i32
    %85 = tpu.dynamic_rotate %79 by %c1_i32_58 dim 1 : vector<16x384xf32>, i32 -> vector<16x384xf32>
    %c383_i32_59 = arith.constant 383 : i32
    %86 = tpu.dynamic_rotate %79 by %c383_i32_59 dim 1 : vector<16x384xf32>, i32 -> vector<16x384xf32>
    %c367_i32_60 = arith.constant 367 : i32
    %87 = tpu.dynamic_rotate %79 by %c367_i32_60 dim 1 : vector<16x384xf32>, i32 -> vector<16x384xf32>
    %c366_i32_61 = arith.constant 366 : i32
    %88 = tpu.dynamic_rotate %79 by %c366_i32_61 dim 1 : vector<16x384xf32>, i32 -> vector<16x384xf32>
    %c365_i32_62 = arith.constant 365 : i32
    %89 = tpu.dynamic_rotate %79 by %c365_i32_62 dim 1 : vector<16x384xf32>, i32 -> vector<16x384xf32>
    %90 = tpu.concatenate %82, %83, %84, %85, %79, %86, %87, %88, %89 in 0 : vector<16x384xf32>, vector<16x384xf32>, vector<16x384xf32>, vector<16x384xf32>, vector<16x384xf32>, vector<16x384xf32>, vector<16x384xf32>, vector<16x384xf32>, vector<16x384xf32> -> vector<144x384xf32>
    %cst_63 = arith.constant dense<0.000000e+00> : vector<16x384xf32>
    %91 = tpu.matmul %81, %90, %cst_63 {dimension_numbers = #tpu.dot_dimension_numbers<[1], [0], [0], [1], [0, 0, 1, 1], [], []>} : vector<16x144xf32>, vector<144x384xf32>, vector<16x384xf32> -> vector<16x384xf32>
    %cst_64 = arith.constant dense<0.000000e+00> : vector<16x384xf32>
    %92 = tpu.matmul %0, %60, %cst_64 {dimension_numbers = #tpu.dot_dimension_numbers<[1], [0], [0], [1], [0, 0, 1, 1], [], []>} : vector<16x8xf32>, vector<8x384xf32>, vector<16x384xf32> -> vector<16x384xf32>
    %93 = arith.addf %91, %92 : vector<16x384xf32>
    %c1_65 = arith.constant 1 : index
    %c0_66 = arith.constant 0 : index
    %c0_67 = arith.constant 0 : index
    %94 = vector.load %arg9[%c1_65, %c0_66, %c0_67] : memref<2x16x384xf32, #tpu.memory_space<vmem>>, vector<1x16x384xf32>
    %95 = vector.shape_cast %94 : vector<1x16x384xf32> to vector<16x384xf32>
    %96 = vector.shape_cast %93 : vector<16x384xf32> to vector<1x16x384xf32>
    tpu.vector_store %arg9[%c1_65, %c0_66, %c0_67], %96 {strides = array<i32>} : memref<2x16x384xf32, #tpu.memory_space<vmem>>, vector<1x16x384xf32>,
    return
  }
  func.func @transform_0(%arg0: i32) -> (i32, i32, i32) {
    %c0_i32 = arith.constant 0 : i32
    %c0_i32_0 = arith.constant 0 : i32
    %c0_i32_1 = arith.constant 0 : i32
    return %arg0, %c0_i32, %c0_i32_0 : i32, i32, i32
  }
  func.func @transform_1(%arg0: i32) -> (i32, i32, i32) {
    %c0_i32 = arith.constant 0 : i32
    %c0_i32_0 = arith.constant 0 : i32
    %c0_i32_1 = arith.constant 0 : i32
    return %arg0, %c0_i32, %c0_i32_0 : i32, i32, i32
  }
  func.func @transform_2(%arg0: i32) -> (i32, i32, i32) {
    %c0_i32 = arith.constant 0 : i32
    %c0_i32_0 = arith.constant 0 : i32
    %c0_i32_1 = arith.constant 0 : i32
    return %arg0, %c0_i32, %c0_i32_0 : i32, i32, i32
  }
  func.func @transform_3(%arg0: i32) -> (i32, i32) {
    %c0_i32 = arith.constant 0 : i32
    %c0_i32_0 = arith.constant 0 : i32
    %c0_i32_1 = arith.constant 0 : i32
    return %c0_i32, %c0_i32_0 : i32, i32
  }
  func.func @transform_4(%arg0: i32) -> (i32, i32) {
    %c0_i32 = arith.constant 0 : i32
    %c0_i32_0 = arith.constant 0 : i32
    %c0_i32_1 = arith.constant 0 : i32
    return %c0_i32, %c0_i32_0 : i32, i32
  }
  func.func @transform_5(%arg0: i32) -> (i32, i32) {
    %c0_i32 = arith.constant 0 : i32
    %c0_i32_0 = arith.constant 0 : i32
    %c0_i32_1 = arith.constant 0 : i32
    return %c0_i32, %c0_i32_0 : i32, i32
  }
  func.func @transform_6(%arg0: i32) -> (i32, i32) {
    %c0_i32 = arith.constant 0 : i32
    %c0_i32_0 = arith.constant 0 : i32
    %c0_i32_1 = arith.constant 0 : i32
    return %c0_i32, %c0_i32_0 : i32, i32
  }
  func.func @transform_7(%arg0: i32) -> (i32, i32) {
    %c0_i32 = arith.constant 0 : i32
    %c0_i32_0 = arith.constant 0 : i32
    %c0_i32_1 = arith.constant 0 : i32
    return %c0_i32, %c0_i32_0 : i32, i32
  }
  func.func @transform_8(%arg0: i32) -> (i32, i32, i32) {
    %c0_i32 = arith.constant 0 : i32
    %c0_i32_0 = arith.constant 0 : i32
    %c0_i32_1 = arith.constant 0 : i32
    return %arg0, %c0_i32, %c0_i32_0 : i32, i32, i32
  }
}

</mosaic_0001>

<bundles_post_ra>
// kernel: tpu_custom_call.1
= control target key start
LH: loop header
LB: loop body
LE: loop exit
PB: predicated region body
PF: predicated region fallthrough
CT: control target
= control target key end

     0   :  { %s4429_s0 = inlined_call_operand.hbm [shape: f32[4,8,384], index: 0, kind: input, shape index: {}]   ;;  %s4430_s1 = inlined_call_operand.hbm [shape: f32[4,16,72], index: 1, kind: input, shape index: {}]   ;;  %s4431_s2 = inlined_call_operand.hbm [shape: f32[4,16,144], index: 2, kind: input, shape index: {}]   ;;  %s4432_s3 = inlined_call_operand.hbm [shape: f32[16,8], index: 3, kind: input, shape index: {}]   ;;  %s4433_s4 = inlined_call_operand.hbm [shape: f32[8,1], index: 4, kind: input, shape index: {}]   ;;  %s4434_s5 = inlined_call_operand.hbm [shape: f32[8,1], index: 5, kind: input, shape index: {}]   ;;  %s4435_s6 = inlined_call_operand.hbm [shape: f32[16,1], index: 6, kind: input, shape index: {}]   ;;  %s4436_s7 = inlined_call_operand.hbm [shape: f32[1,384], index: 7, kind: input, shape index: {}]   ;;  %s4437_s8 = inlined_call_operand.hbm [shape: f32[4,16,384], index: 8, kind: output, shape index: {}]  }
   0x1   :  { %4462 = sst [smem:[#allocation29_spill]] %s4430_s1 }
   0x2   :  { %4463 = sst [smem:[#allocation30_spill]] %s4432_s3 }
   0x3   :  { %4464 = sst [smem:[#allocation31_spill]] %s4434_s5 }
   0x4   :  { %4465 = sst [smem:[#allocation32_spill]] %s4437_s8 }
   0x5   :  { %13 = vsyncpa [#allocation3], 0 }
   0x6   :  { %15 = vsyncpa [#allocation3 + $0x1], 0 }
   0x7   :  { %16 = vsyncpa [#allocation6], 0 }
   0x8   :  { %18 = vsyncpa [#allocation6 + $0x1], 0 }
   0x9   :  { %19 = vsyncpa [#allocation9], 0 }
   0xa   :  { %20 = vsyncpa [#allocation12], 0 }
   0xb   :  { %21 = vsyncpa [#allocation15], 0 }
   0xc   :  { %22 = vsyncpa [#allocation4], 0 }
   0xd   :  { %24 = vsyncpa [#allocation4 + $0x1], 0  ;;  %s3344_s27 = smov 0   ;;  %s3346_s28 = smov 0  }
   0xe   :  { %s3348_s29 = smov 0   ;;  %s3350_s30 = smov 0  }
   0xf LB: > { %4466 = sst [smem:[#allocation23_spill]] %s3257_s27  ;;  %s3365_s9 = sadd.s32 4294967295, %s3269_s30   ;;  %s3269_s30 = sphi %s3350_s30, %s4505_s30   ;;  %s3265_s29 = sphi %s3348_s29, %s4507_s29   ;;  %s3261_s28 = sphi %s3346_s28, %s4509_s28   ;;  %s3257_s27 = sphi %s3344_s27, %s4508_s27  }
  0x10   : > { %4467 = sst [smem:[#allocation24_spill]] %s3265_s29  ;;  %s2158_s10 = sadd.s32 4294967294, %s3269_s30  }
  0x11   : > { %p50_p0 = scmp.ne.s32.totalorder %s3261_s28, %s3257_s27  ;;  %p4438_p1 = scmp.eq.s32.totalorder %s3365_s9, 0 }
  0x12   : > { %p237_p3 = scmp.eq.s32.totalorder %s2158_s10, 1  ;;  %p2159_p5 = scmp.ge.s32.totalorder %s3269_s30, 1 }
  0x13   : > { %p3374_p4 = por %p4438_p1, %p50_p0  ;;  %p244_p7 = scmp.lt.s32.totalorder %s3269_s30, 3 }
  0x14   : > { %p3379_p6 = por %p237_p3, %p50_p0  ;;  %s3271_s14 = smov [#allocation8]  }
  0x15   : > { %s4468_s11 = scalar_select %p3374_p4, 1, 0 }
  0x16   : > { %s4469_s12 = scalar_select %p3379_p6, 1, 0 }
  0x17   : > { %p3384_p8 = pnand %p2159_p5, %p244_p7  ;;  %s256_s15 = sshll.u32 %s3271_s14, 4  ;;  %s3388_s15 = int_to_ptr.vmem [resolvable:$true] %s256_s15 }
  0x18   : > { %4470 = sst [smem:[#allocation25_spill]] %s4469_s12  ;;  %s3272_s17 = smov [#allocation11]  }
  0x19   : > { %s4471_s13 = scalar_select %p3384_p8, 1, 0 }
  0x1a   : > { %p2544_p9 = pneg %p3384_p8  ;;  %s281_s18 = sshll.u32 %s3272_s17, 4  ;;  %s3399_s18 = int_to_ptr.vmem [resolvable:$true] %s281_s18 }
  0x1b   : > { %s4473_s3 = sld [smem:[#allocation30_spill]] }
  0x1c   : > { %p3395_p11 = pnand %p2544_p9, %p4438_p1 }
  0x1e   : > { %s4472_s16 = scalar_select %p3395_p11, 1, 0 }
  0x1f   : > { %p3409_p13 = pneg %p3395_p11 }
  0x21   : > { %s2957_s21 = scalar_lea.hbm %s4473_s3, 256 }
  0x22   : > { %p2958_p12 = scmp.ne.s32.totalorder %s4473_s3, %s2957_s21  ;;  %p2964_p5 = scmp.lt.u32.totalorder %s2957_s21, %s4473_s3 }
  0x23   : > { %s4474_s24 = scalar_select %p3409_p13, 1, 0 }
  0x24   : > { %p2960_p0 = pnand %p3409_p13, %p2958_p12 }
  0x26   : > { %p2961_p3 = pneg %p2960_p0 }
  0x28   : > { %p2966_p7 = pnand %p2964_p5, %p2961_p3 }
  0x2a   : > { %2969 = shalt.err (!%p2966_p7)
}
  0x2b   : > { %s2970_s10 = scalar_lea.vmem %s3388_s15, 256  ;;  %p2978_p2 = scmp.lt.s32.totalorder %s3388_s15, %s3388_s15 }
  0x2c   : > { %p2971_p9 = scmp.ne.s32.totalorder %s3388_s15, %s2970_s10  ;;  %p2979_p6 = scmp.lt.s32.totalorder %s2970_s10, %s2970_s10 }
  0x2e   : > { %p2973_p10 = pnand %p2971_p9, %p3409_p13  ;;  %p2980_p12 = por %p2979_p6, %p2978_p2 }
  0x30   : > { %p2974_p1 = pneg %p2973_p10 }
  0x32   : > { %p2981_p0 = pnand %p2980_p12, %p2974_p1 }
  0x34   : > { %2984 = shalt.err (!%p2981_p0)
}
  0x35   : > { %s4440_s14 = smov 128   ;;  %s4442_s17 = smov 8  }
  0x36   : > { %2547 = dma.hbm_to_vmem [thread:$0]  (!%p3395_p11), %s4473_s3, 256, %s3388_s15, [#allocation9], %s4440_s14, %s4440_s14, %s4442_s17  }
  0x37   : > { %s4475_s5 = sld [smem:[#allocation31_spill]] }
  0x3d   : > { %s2985_s23 = scalar_lea.hbm %s4475_s5, 128 }
  0x3e   : > { %p2986_p1 = scmp.ne.s32.totalorder %s4475_s5, %s2985_s23  ;;  %p2992_p10 = scmp.lt.u32.totalorder %s2985_s23, %s4475_s5 }
  0x40   : > { %p2988_p2 = pnand %p2986_p1, %p3409_p13 }
  0x42   : > { %p2989_p6 = pneg %p2988_p2 }
  0x44   : > { %p2994_p3 = pnand %p2992_p10, %p2989_p6 }
  0x46   : > { %2997 = shalt.err (!%p2994_p3)
}
  0x47   : > { %s2998_s15 = scalar_lea.vmem %s3399_s18, 128  ;;  %p3006_p12 = scmp.lt.s32.totalorder %s3399_s18, %s3399_s18 }
  0x48   : > { %p2999_p5 = scmp.ne.s32.totalorder %s3399_s18, %s2998_s15  ;;  %p3007_p0 = scmp.lt.s32.totalorder %s2998_s15, %s2998_s15 }
  0x4a   : > { %p3001_p7 = pnand %p2999_p5, %p3409_p13  ;;  %p3008_p1 = por %p3007_p0, %p3006_p12 }
  0x4c   : > { %p3002_p9 = pneg %p3001_p7 }
  0x4e   : > { %p3009_p2 = pnand %p3008_p1, %p3002_p9 }
  0x50   : > { %3012 = shalt.err (!%p3009_p2)
}
  0x51   : > { %2553 = dma.hbm_to_vmem [thread:$0]  (!%p3395_p11), %s4475_s5, 128, %s3399_s18, [#allocation12]  }
  0x52   : > { %s3457_s20 = sadd.s32 1, %s3269_s30   ;;  %s37_s21 = sadd.s32 1, %s3265_s29 }
  0x53   : > { %4476 = sst [smem:[#allocation26_spill]] %s3457_s20  ;;  %s34_s22 = ssub.s32 %s3269_s30, %s3457_s20 }
  0x54   : > { %p44_p6 = scmp.ne.s32.totalorder %s3265_s29, %s3261_s28  ;;  %p35_p10 = scmp.eq.s32.totalorder %s34_s22, 0 }
  0x55   : > { %p45_p3 = scmp.eq.s32.totalorder %s3269_s30, 0  ;;  %p4477_p5 = scmp.eq.s32.totalorder %s3365_s9, 1 }
  0x56   : > { %p2579_p9 = scmp.lt.s32.totalorder %s3269_s30, 2  ;;  %s3476_s26 = sand.u32 1, %s3265_s29  }
  0x57   : > { %p3467_p7 = por %p4477_p5, %p44_p6  ;;  %p46_p12 = por %p45_p3, %p44_p6 }
  0x58   : > { %s3473_s25 = scalar_select %p35_p10, %s3265_s29, %s37_s21  }
  0x59   : > { %s4478_s23 = scalar_select %p3467_p7, 1, 0 }
  0x5a   : > { %4480 = sst [smem:[#allocation28_spill]] %s3473_s25  ;;  %s338_s18 = sand.u32 1, %s3269_s30  }
  0x5b   : > { %4479 = sst [smem:[#allocation27_spill]] %s4478_s23  ;;  %s2169_s10 = sshll.u32 %s3476_s26, 5 }
  0x5c   : > { %p3480_p0 = pnand %p2579_p9, %p46_p12  ;;  %s2230_s12 = sshll.u32 %s3269_s30, 9 }
  0x5d   : > { %s4482_s1 = sld [smem:[#allocation29_spill]]  ;;  %s342_s21 = scalar_lea.vmem [#allocation5], %s2169_s10 }
  0x5e   : > { %s4481_s15 = scalar_select %p3480_p0, 1, 0 }
  0x5f   : > { %s350_s17 = sshll.u32 %s342_s21, 4  ;;  %s3275_s3 = smov [#allocation10]   ;;  %s3490_s17 = int_to_ptr.vmem [resolvable:$true] %s350_s17 }
  0x60   : > { %s3492_s5 = sshll.u32 %s3275_s3, 4  ;;  %s3494_s25 = scalar_lea.sflag [#allocation6], %s338_s18  ;;  %s271_s5 = int_to_ptr.vmem [resolvable:$true] %s3492_s5 }
  0x61   : > { %p3500_p2 = pneg %p3480_p0 }
  0x63   : > { %s3488_s14 = scalar_lea.hbm %s4482_s1, %s2230_s12  ;;  %s3018_s22 = scalar_lea.hbm %s4482_s1, 1024 }
  0x64   : > { %s3013_s29 = scalar_lea.hbm %s3488_s14, 512  ;;  %p3019_p3 = scmp.lt.u32.totalorder %s3488_s14, %s4482_s1 }
  0x65   : > { %p3014_p1 = scmp.ne.s32.totalorder %s3488_s14, %s3013_s29  ;;  %p3020_p5 = scmp.lt.u32.totalorder %s3018_s22, %s3013_s29 }
  0x66   : > { %s4483_s19 = scalar_select %p3500_p2, 1, 0 }
  0x67   : > { %p3016_p6 = pnand %p3500_p2, %p3014_p1  ;;  %p3021_p9 = por %p3020_p5, %p3019_p3 }
  0x68   : > { %p3022_p12 = scmp.lt.u32.totalorder %s3013_s29, %s3488_s14 }
  0x69   : > { %p3017_p10 = pneg %p3016_p6 }
  0x6a   : > { %p3023_p7 = por %p3022_p12, %p3021_p9 }
  0x6c   : > { %p3024_p4 = pnand %p3023_p7, %p3017_p10 }
  0x6e   : > { %3027 = shalt.err (!%p3024_p4)
}
  0x6f   : > { %s3028_s18 = scalar_lea.vmem %s3490_s17, 512  ;;  %s3276_s10 = smov [#allocation5]  }
  0x70   : > { %p3029_p1 = scmp.ne.s32.totalorder %s3490_s17, %s3028_s18  ;;  %s3033_s12 = sshll.u32 %s3276_s10, 4  ;;  %s3034_s12 = int_to_ptr.vmem [resolvable:$false] %s3033_s12 }
  0x71   : > { %s3035_s21 = scalar_lea.vmem %s3034_s12, 1024  ;;  %p3036_p11 = scmp.lt.s32.totalorder %s3490_s17, %s3034_s12 }
  0x72   : > { %p3031_p6 = pnand %p3029_p1, %p3500_p2  ;;  %p3037_p13 = scmp.lt.s32.totalorder %s3035_s21, %s3028_s18 }
  0x74   : > { %p3032_p8 = pneg %p3031_p6  ;;  %p3038_p3 = por %p3037_p13, %p3036_p11 }
  0x76   : > { %p3039_p5 = pnand %p3038_p3, %p3032_p8 }
  0x78   : > { %3042 = shalt.err (!%p3039_p5)
}
  0x79   : > { %s4484_s29 = smov 8   ;;  %s4485_s22 = smov 128  }
  0x7a   : > { %2566 = dma.hbm_to_vmem [thread:$0]  (!%p3480_p0), %s3488_s14, 512, %s3490_s17, %s3494_s25, %s4485_s22, %s4485_s22, %s4484_s29  }
  0x7b   : > { %s3043_s12 = scalar_lea.hbm %s4433_s4, 128  ;;  %p4486_p8 = scmp.ne.s32.totalorder %s4474_s24, 0 }
  0x7c   : > { %p3044_p4 = scmp.ne.s32.totalorder %s4433_s4, %s3043_s12  ;;  %p3050_p7 = scmp.lt.u32.totalorder %s3043_s12, %s4433_s4 }
  0x7e   : > { %p3046_p11 = pnand %p3044_p4, %p4486_p8 }
  0x80   : > { %p3047_p13 = pneg %p3046_p11 }
  0x82   : > { %p3052_p10 = pnand %p3050_p7, %p3047_p13 }
  0x84   : > { %3055 = shalt.err (!%p3052_p10)
}
  0x85   : > { %s3056_s27 = scalar_lea.vmem %s271_s5, 128  ;;  %p3064_p6 = scmp.lt.s32.totalorder %s271_s5, %s271_s5 }
  0x86   : > { %p3057_p9 = scmp.ne.s32.totalorder %s271_s5, %s3056_s27  ;;  %p3065_p3 = scmp.lt.s32.totalorder %s3056_s27, %s3056_s27 }
  0x88   : > { %p3059_p12 = pnand %p3057_p9, %p4486_p8  ;;  %p3066_p5 = por %p3065_p3, %p3064_p6 }
  0x8a   : > { %p3060_p1 = pneg %p3059_p12 }
  0x8c   : > { %p3067_p0 = pnand %p3066_p5, %p3060_p1 }
  0x8e   : > { %3070 = shalt.err (!%p3067_p0)
}
  0x8f   : > { %p4487_p4 = scmp.ne.s32.totalorder %s4472_s16, 0  ;;  %s3277_s1 = smov [#allocation13]  }
  0x90   : > { %s291_s20 = sshll.u32 %s3277_s1, 4  ;;  %s3278_s3 = smov [#allocation14]   ;;  %s292_s20 = int_to_ptr.vmem [resolvable:$true] %s291_s20 }
  0x91   : > { %2550 = dma.hbm_to_vmem [thread:$0]  (!%p4487_p4), %s4433_s4, 128, %s271_s5, [#allocation9]  }
  0x92   : > { %s305_s10 = sshll.u32 %s3278_s3, 4  ;;  %s3071_s21 = scalar_lea.hbm %s4435_s6, 256  ;;  %s306_s10 = int_to_ptr.vmem [resolvable:$true] %s305_s10 }
  0x93   : > { %p3072_p0 = scmp.ne.s32.totalorder %s4435_s6, %s3071_s21  ;;  %p3078_p7 = scmp.lt.u32.totalorder %s3071_s21, %s4435_s6 }
  0x95   : > { %p3074_p11 = pnand %p3072_p0, %p4486_p8 }
  0x97   : > { %p3075_p13 = pneg %p3074_p11 }
  0x99   : > { %p3080_p10 = pnand %p3078_p7, %p3075_p13 }
  0x9b   : > { %3083 = shalt.err (!%p3080_p10)
}
  0x9c   : > { %s3084_s5 = scalar_lea.vmem %s292_s20, 256  ;;  %p3092_p6 = scmp.lt.s32.totalorder %s292_s20, %s292_s20 }
  0x9d   : > { %p3085_p9 = scmp.ne.s32.totalorder %s292_s20, %s3084_s5  ;;  %p3093_p3 = scmp.lt.s32.totalorder %s3084_s5, %s3084_s5 }
  0x9f   : > { %p3087_p12 = pnand %p3085_p9, %p4486_p8  ;;  %p3094_p5 = por %p3093_p3, %p3092_p6 }
  0xa1   : > { %p3088_p1 = pneg %p3087_p12 }
  0xa3   : > { %p3095_p2 = pnand %p3094_p5, %p3088_p1 }
  0xa5   : > { %3098 = shalt.err (!%p3095_p2)
}
  0xa6   : > { %2556 = dma.hbm_to_vmem [thread:$0]  (!%p4487_p4), %s4435_s6, 256, %s292_s20, [#allocation12], %s4485_s22, %s4485_s22, %s4484_s29  }
  0xa7   : > { %s3099_s3 = scalar_lea.hbm %s4436_s7, 48 }
  0xa8   : > { %p3100_p0 = scmp.ne.s32.totalorder %s4436_s7, %s3099_s3  ;;  %p3106_p13 = scmp.lt.u32.totalorder %s3099_s3, %s4436_s7 }
  0xaa   : > { %p3102_p2 = pnand %p3100_p0, %p4486_p8 }
  0xac   : > { %p3103_p11 = pneg %p3102_p2 }
  0xae   : > { %p3108_p7 = pnand %p3106_p13, %p3103_p11 }
  0xb0   : > { %3111 = shalt.err (!%p3108_p7)
}
  0xb1   : > { %s3112_s14 = scalar_lea.vmem %s306_s10, 48  ;;  %s3119_s29 = scalar_lea.vmem %s306_s10, 64 }
  0xb2   : > { %p3113_p10 = scmp.ne.s32.totalorder %s306_s10, %s3112_s14  ;;  %p3120_p1 = scmp.lt.s32.totalorder %s306_s10, %s306_s10 }
  0xb3   : > { %p3121_p6 = scmp.lt.s32.totalorder %s3119_s29, %s3112_s14 }
  0xb4   : > { %p3115_p9 = pnand %p3113_p10, %p4486_p8 }
  0xb5   : > { %p3122_p3 = por %p3121_p6, %p3120_p1 }
  0xb6   : > { %p3116_p12 = pneg %p3115_p9 }
  0xb8   : > { %p3123_p5 = pnand %p3122_p3, %p3116_p12 }
  0xba   : > { %3126 = shalt.err (!%p3123_p5)
}
  0xbb   : > { %2559 = dma.hbm_to_vmem [thread:$0]  (!%p4487_p4), %s4436_s7, 48, %s306_s10, [#allocation15]  }
  0xbc   : > { %s2511_s24 = smul.u32 48, %s3476_s26  ;;  %s2173_s8 = sshll.u32 %s3476_s26, 6 }
  0xbd   : > { %s2512_s5 = smul.u32 768, %s3269_s30  ;;  %s317_s12 = scalar_lea.sflag [#allocation3], %s3476_s26 }
  0xbe   : > { %s320_s16 = scalar_lea.vmem [#allocation2], %s2511_s24  ;;  %p4488_p4 = scmp.ne.s32.totalorder %s4483_s19, 0 }
  0xbf   : > { %s3591_s1 = scalar_lea.hbm %s4429_s0, %s2512_s5  ;;  %s328_s3 = sshll.u32 %s320_s16, 4  ;;  %s3593_s3 = int_to_ptr.vmem [resolvable:$true] %s328_s3 }
  0xc0   : > { %s3127_s18 = scalar_lea.hbm %s3591_s1, 768  ;;  %s3132_s27 = scalar_lea.hbm %s4429_s0, 1536 }
  0xc1   : > { %p3128_p8 = scmp.ne.s32.totalorder %s3591_s1, %s3127_s18  ;;  %p3133_p11 = scmp.lt.u32.totalorder %s3591_s1, %s4429_s0 }
  0xc2   : > { %p3134_p13 = scmp.lt.u32.totalorder %s3132_s27, %s3127_s18  ;;  %p3136_p10 = scmp.lt.u32.totalorder %s3127_s18, %s3591_s1 }
  0xc3   : > { %p3130_p0 = pnand %p3128_p8, %p4488_p4 }
  0xc4   : > { %p3135_p7 = por %p3134_p13, %p3133_p11 }
  0xc5   : > { %p3131_p2 = pneg %p3130_p0 }
  0xc6   : > { %p3137_p9 = por %p3136_p10, %p3135_p7 }
  0xc8   : > { %p3138_p12 = pnand %p3137_p9, %p3131_p2 }
  0xca   : > { %3141 = shalt.err (!%p3138_p12)
}
  0xcb   : > { %s3142_s22 = scalar_lea.vmem %s3593_s3, 768  ;;  %s3279_s20 = smov [#allocation2]  }
  0xcc   : > { %p3143_p1 = scmp.ne.s32.totalorder %s3593_s3, %s3142_s22  ;;  %s3147_s24 = sshll.u32 %s3279_s20, 4  ;;  %s3148_s24 = int_to_ptr.vmem [resolvable:$false] %s3147_s24 }
  0xcd   : > { %s3149_s5 = scalar_lea.vmem %s3148_s24, 1536  ;;  %p3150_p5 = scmp.lt.s32.totalorder %s3593_s3, %s3148_s24 }
  0xce   : > { %p3145_p6 = pnand %p3143_p1, %p4488_p4  ;;  %p3151_p8 = scmp.lt.s32.totalorder %s3149_s5, %s3142_s22 }
  0xd0   : > { %p3146_p3 = pneg %p3145_p6  ;;  %p3152_p0 = por %p3151_p8, %p3150_p5 }
  0xd2   : > { %p3153_p11 = pnand %p3152_p0, %p3146_p3 }
  0xd4   : > { %3156 = shalt.err (!%p3153_p11)
}
  0xd5   : > { %s3280_s23 = smov 384   ;;  %s3281_s17 = smov 24  }
  0xd6   : > { %p4489_p2 = scmp.ne.s32.totalorder %s4481_s15, 0  ;;  %s2232_s16 = sshll.u32 %s3269_s30, 10 }
  0xd7   : > { %s364_s18 = scalar_lea.vmem [#allocation7], %s2173_s8  ;;  %s3625_s14 = scalar_lea.hbm %s4431_s2, %s2232_s16 }
  0xd8   : > { %2563 = dma.hbm_to_vmem [thread:$0]  (!%p4489_p2), %s3591_s1, 768, %s3593_s3, %s317_s12, %s3280_s23, %s3280_s23, %s3281_s17  }
  0xd9   : > { %s372_s10 = sshll.u32 %s364_s18, 4  ;;  %s3157_s29 = scalar_lea.hbm %s3625_s14, 1024  ;;  %s3627_s10 = int_to_ptr.vmem [resolvable:$true] %s372_s10 }
  0xda   : > { %p3158_p13 = scmp.ne.s32.totalorder %s3625_s14, %s3157_s29  ;;  %s3162_s8 = scalar_lea.hbm %s4431_s2, 2048 }
  0xdb   : > { %p3163_p9 = scmp.lt.u32.totalorder %s3625_s14, %s4431_s2  ;;  %p3164_p12 = scmp.lt.u32.totalorder %s3162_s8, %s3157_s29 }
  0xdc   : > { %p3160_p7 = pnand %p3158_p13, %p4488_p4  ;;  %p3166_p6 = scmp.lt.u32.totalorder %s3157_s29, %s3625_s14 }
  0xdd   : > { %p3165_p1 = por %p3164_p12, %p3163_p9 }
  0xde   : > { %p3161_p10 = pneg %p3160_p7 }
  0xdf   : > { %p3167_p3 = por %p3166_p6, %p3165_p1 }
  0xe1   : > { %p3168_p5 = pnand %p3167_p3, %p3161_p10 }
  0xe3   : > { %3171 = shalt.err (!%p3168_p5)
}
  0xe4   : > { %s3172_s22 = scalar_lea.vmem %s3627_s10, 1024  ;;  %s3282_s20 = smov [#allocation7]  }
  0xe5   : > { %p3173_p8 = scmp.ne.s32.totalorder %s3627_s10, %s3172_s22  ;;  %s3177_s24 = sshll.u32 %s3282_s20, 4  ;;  %s3178_s24 = int_to_ptr.vmem [resolvable:$false] %s3177_s24 }
  0xe6   : > { %s3179_s5 = scalar_lea.vmem %s3178_s24, 2048  ;;  %p3180_p13 = scmp.lt.s32.totalorder %s3627_s10, %s3178_s24 }
  0xe7   : > { %p3175_p0 = pnand %p3173_p8, %p4488_p4  ;;  %p3181_p7 = scmp.lt.s32.totalorder %s3179_s5, %s3172_s22 }
  0xe9   : > { %p3176_p11 = pneg %p3175_p0  ;;  %p3182_p9 = por %p3181_p7, %p3180_p13 }
  0xeb   : > { %p3183_p12 = pnand %p3182_p9, %p3176_p11 }
  0xed   : > { %3186 = shalt.err (!%p3183_p12)
}
  0xee   : > { %s3283_s23 = smov 256   ;;  %s3284_s17 = smov 16  }
  0xef   : > { %2569 = dma.hbm_to_vmem [thread:$0]  (!%p4489_p2), %s3625_s14, 1024, %s3627_s10, %s3494_s25, %s3283_s23, %s3283_s23, %s3284_s17  }
  0xf0   : > { %p4490_p4 = scmp.ne.s32.totalorder %s4471_s13, 0 }
  0xf1   : > { %s3654_s19 = sand.u32 (!%p4490_p4), 1, %s3261_s28   ;;  %p4491_p10 = scmp.ne.s32.totalorder (!%p4490_p4), %s4468_s11, 0 }
  0xf2   : > { %384 = sbr.rel (%p4490_p4) target bundleno = 1594 (0x63a), region = 52  ;;  %s387_s18 = scalar_lea.sflag (!%p4490_p4), [#allocation3], %s3654_s19 }
  0xf3   : > { %s2513_s16 = smul.u32 (!%p4490_p4), 48, %s3654_s19 }
  0xf5   : > { %s3658_s21 = scalar_lea.vmem (!%p4490_p4), [#allocation2], %s2513_s16 }
  0xf9   : > { %3232 = dma.done.wait (%p4491_p10), %s387_s18, 768  }
  0xfa   : > { %3234 = vsyncadd (%p4491_p10), %s387_s18, 4294966528  ;;  %s395_s13 = sand.u32 1, %s3365_s9   ;;  %s2178_s25 = sshll.u32 %s3654_s19, 5 }
  0xfb   : > { %s396_s15 = scalar_lea.sflag [#allocation6], %s395_s13  ;;  %s3666_s10 = scalar_lea.vmem [#allocation5], %s2178_s25 }
  0xfc   : > { %3236 = dma.done.wait (%p4491_p10), %s396_s15, 1536  }
  0xfd   : > { %3238 = vsyncadd (%p4491_p10), %s396_s15, 4294965760  ;;  %s2179_s27 = sshll.u32 %s3654_s19, 6  ;;  %p4492_p2 = scmp.eq.s32.totalorder %s3365_s9, 0 }
  0xfe   : > { %s3673_s14 = scalar_lea.vmem [#allocation7], %s2179_s27 }
  0xff   : > { %3240 = dma.done.wait (%p4492_p2), [#allocation9], 384   ;;  %p4493_p1 = pmov %p4492_p2 }
 0x101   : > { %3242 = vsyncadd (%p4493_p1), [#allocation9], 4294966912  ;;  %p4494_p6 = pmov %p4493_p1 }
 0x102   : > { %p4495_p3 = pmov %p4493_p1 }
 0x103   : > { %3244 = dma.done.wait (%p4494_p6), [#allocation12], 384  }
 0x104   : > { %3246 = vsyncadd (%p4495_p3), [#allocation12], 4294966912  ;;  %p4496_p5 = pmov %p4493_p1 }
 0x105   : > { %p4497_p8 = pmov %p4493_p1 }
 0x106   : > { %3248 = dma.done.wait (%p4496_p5), [#allocation15], 48  }
 0x107   : > { %3250 = vsyncadd (%p4497_p8), [#allocation15], 4294967248  ;;  %v3285_v0 = vmov 0   ;;  %v479_v1 = vld [vmem:[#allocation10] sm:$0xff]  ;;  %v485_v2 = vld [vmem:[#allocation11] sm:$0xff]  ;;  %v487_v3 = vlaneseq  ;;  %s3286_s11 = smov 19  }
 0x108   : > { %2642 = vset.pattern.permute.xlu0 %v3285_v0  ;;  %2678 = vset.pattern.permute.xlu1 %v3285_v0  ;;  %v477_v4 = vld [vmem:[#allocation14] sm:$0x7]  ;;  %v3698_v15 = vld [vmem:[%s3658_s21 + $0x8] sm:$0xff]  ;;  %v2197_v17 = vld [vmem:[%s3658_s21 + $0x18] sm:$0xff]  ;;  %s3287_s29 = smov 17   ;;  %s3288_s1 = smov 18  }
 0x109   : > { %482 = vperm.xlu0 %2642, %v479_v1   ;;  %v488_v5 = vshrl.u32 %v487_v3, 7  ;;  %vm478_vm0 = vcmp.gt.f32.partialorder %v477_v4, 0.0  ;;  %v3695_v14 = vld [vmem:[%s3658_s21] sm:$0xff]  ;;  %v3701_v16 = vld [vmem:[%s3658_s21 + $0x10] sm:$0xff]  ;;  %v2199_v19 = vld [vmem:[%s3658_s21 + $0x28] sm:$0xff]  ;;  %s3289_s26 = smov 127  }
 0x10a   : > { %v486_v9 = vsel %vm478_vm0, 1, %v3285_v0  ;;  %v2198_v18 = vld [vmem:[%s3658_s21 + $0x20] sm:$0xff]  ;;  %s3290_s8 = smov 1   ;;  %s3291_s3 = smov 111   ;;  %vm624_vm4 = vcmask 588800   ;;  %v3293_v42 = vmov 0.0  }
 0x10b   : > { %v489_v6 = vsub.s32 0, %v488_v5  ;;  %v493_v7 = vsub.s32 1, %v488_v5  ;;  %v497_v8 = vsub.s32 2, %v488_v5  ;;  %s3292_s12 = smov 109   ;;  %v3755_v41 = vld [vmem:[%s3666_s10] sm:$0xff]  ;;  %695 = vmatprep.mubr.f32.mxu0 %v3293_v42  ;;  %s3294_s22 = smov 110  }
 0x10c   : > { %2279 = vmatprep.mubr.msk.f32.mxu1 %vm624_vm4, %v3755_v41  ;;  %v511_v43 = vld [vmem:[#allocation13 + $0x8] sm:$0xff]  ;;  %v510_v44 = vld [vmem:[#allocation13] sm:$0xff]  ;;  %v3768_v46 = vand.u32 127, %v487_v3  ;;  %vm937_vm13 = vcmask 64512   ;;  %vm1096_vm14 = vcmask 130048   ;;  %s2514_s20 = smul.u32 96, %s3654_s19 }
 0x10d   : > { %504 = vperm.xlu0 %2642, %v485_v2   ;;  %v3688_v10 = vrot.slane %v486_v9, %v489_v6  ;;  %v3690_v11 = vrot.slane %v486_v9, %v493_v7  ;;  %v3692_v12 = vrot.slane %v486_v9, %v497_v8  ;;  %s2515_s5 = smul.u32 1536, %s3365_s9  ;;  %s4498_s23 = sld [smem:[#allocation27_spill]] }
 0x10e   : > { %vm550_vm5 = vcmp.lt.s32.totalorder %v3768_v46, 19  ;;  %vm560_vm6 = vcmp.lt.s32.totalorder %v3768_v46, 18  ;;  %vm570_vm7 = vcmp.lt.s32.totalorder %v3768_v46, 17  ;;  %vm580_vm8 = vcmp.lt.s32.totalorder %v3768_v46, 1  ;;  %s4199_s24 = scalar_lea.vmem [#allocation16], %s2514_s20  ;;  %s1980_s9 = scalar_lea.sflag [#allocation4], %s3654_s19 }
 0x10f   : > { %vm499_vm1 = vcmp.eq.s32.totalorder %v3688_v10, 1  ;;  %vm500_vm2 = vcmp.eq.s32.totalorder %v3690_v11, 1  ;;  %vm501_vm3 = vcmp.eq.s32.totalorder %v3692_v12, 1  ;;  %vm590_vm9 = vcmp.lt.s32.totalorder %v3768_v46, 127  ;;  %s1994_s17 = sshll.u32 %s4199_s24, 4  ;;  %s3296_s15 = smov [#allocation16]   ;;  %s4382_s17 = int_to_ptr.vmem [resolvable:$true] %s1994_s17 }
 0x110   : > { %vm600_vm10 = vcmp.lt.s32.totalorder %v3768_v46, 111  ;;  %vm610_vm11 = vcmp.lt.s32.totalorder %v3768_v46, 110  ;;  %vm620_vm12 = vcmp.lt.s32.totalorder %v3768_v46, 109  ;;  %s3187_s25 = scalar_lea.vmem %s4382_s17, 1536 }
 0x111   : > { %p3188_p0 = scmp.ne.s32.totalorder %s4382_s17, %s3187_s25 }
 0x113   : > { %p4500_p11 = scmp.ne.s32.totalorder %s4498_s23, 0 }
 0x115   : > { %p3189_p13 = pnand %p3188_p0, %p4500_p11 }
 0x117   : > { %p3190_p7 = pneg %p3189_p13 }
 0x188   : > { %v483_v13 = vpop.permute.xlu0 %482 }
 0x189   : > { %v531_v20 = vmul.f32 %v3695_v14, %v483_v13  ;;  %v532_v21 = vmul.f32 %v3698_v15, %v483_v13  ;;  %v533_v22 = vmul.f32 %v3701_v16, %v483_v13  ;;  %v1265_v23 = vmul.f32 %v2197_v17, %v483_v13 }
 0x18a   : > { %v1266_v24 = vmul.f32 %v2198_v18, %v483_v13  ;;  %v1267_v26 = vmul.f32 %v2199_v19, %v483_v13 }
 0x18c   : > { %v505_v25 = vpop.permute.xlu0 %504 }
 0x18d   : > { %v507_v27 = vsel %vm499_vm1, %v505_v25, -1e+30  ;;  %v508_v28 = vsel %vm500_vm2, %v505_v25, -1e+30  ;;  %v509_v29 = vsel %vm501_vm3, %v505_v25, -1e+30 }
 0x18e   : > { %v534_v30 = vadd.f32 %v531_v20, %v507_v27  ;;  %v535_v31 = vadd.f32 %v532_v21, %v508_v28  ;;  %v536_v32 = vadd.f32 %v533_v22, %v509_v29  ;;  %v3718_v33 = vadd.f32 %v1265_v23, %v507_v27 }
 0x18f   : > { %v3720_v34 = vadd.f32 %v1266_v24, %v508_v28  ;;  %v3722_v35 = vadd.f32 %v1267_v26, %v509_v29 }
 0x190   : > { %v3724_v36 = vmax.f32 %v534_v30, 0.0  ;;  %v3726_v37 = vmax.f32 %v535_v31, 0.0  ;;  %v3728_v38 = vmax.f32 %v536_v32, 0.0 }
 0x192   : > { %546 = vrot.lane.b32.xlu0 %v3728_v38, %s3286_s11  ;;  %v2643_v39 = vpack.i.bf16 %v3726_v37, %v3724_v36  ;;  %v2663_v40 = vpack.i.bf16 %v3728_v38, %v3726_v37 }
 0x194   : > { %2644 = vrot.lane.b32.xlu1 %v2643_v39, %s3286_s11 }
 0x196   : > { %2654 = vrot.lane.b32.xlu0 %v2643_v39, %s3287_s29 }
 0x198   : > { %2649 = vrot.lane.b32.xlu1 %v2643_v39, %s3288_s1 }
 0x19a   : > { %568 = vrot.lane.b32.xlu0 %v3728_v38, %s3287_s29 }
 0x19c   : > { %558 = vrot.lane.b32.xlu1 %v3728_v38, %s3288_s1 }
 0x19e   : > { %2664 = vrot.lane.b32.xlu0 %v2663_v40, %s3289_s26 }
 0x1a0   : > { %2659 = vrot.lane.b32.xlu1 %v2643_v39, %s3290_s8 }
 0x1a2   : > { %2669 = vrot.lane.b32.xlu0 %v2663_v40, %s3291_s3 }
 0x1a4   : > { %578 = vrot.lane.b32.xlu1 %v3728_v38, %s3290_s8 }
 0x1a6   : > { %594 = vrot.lane.b32.xlu0 %v3724_v36, %s3291_s3 }
 0x1a8   : > { %584 = vrot.lane.b32.xlu1 %v3724_v36, %s3289_s26 }
 0x1aa   : > { %616 = vrot.lane.b32.xlu0 %v3726_v37, %s3292_s12 }
 0x1ac   : > { %2674 = vrot.lane.b32.xlu1 %v2663_v40, %s3294_s22 }
 0x1ae   : > { %614 = vrot.lane.b32.xlu0 %v3724_v36, %s3292_s12 }
 0x1b0   : > { %604 = vrot.lane.b32.xlu1 %v3724_v36, %s3294_s22 }
 0x1b2   : > { %519 = vperm.xlu0 %2642, %v511_v43  }
 0x1b4   : > { %618 = vrot.lane.b32.xlu1 %v3728_v38, %s3292_s12 }
 0x1b8   : > { %514 = vperm.xlu1 %2678, %v510_v44  }
 0x204   : > { %v547_v45 = vpop.permute.xlu0 %546 }
 0x206   : > { %v2645_v47 = vpop.permute.xlu1 %2644 }
 0x207   : > { %v2647_v49 = vunpack.i.h.bf16 %v2645_v47  ;;  %v2646_v50 = vunpack.i.l.bf16 %v2645_v47 }
 0x208   : > { %v2655_v48 = vpop.permute.xlu0 %2654 }
 0x209   : > { %v552_v55 = vsel %vm550_vm5, %v2646_v50, %v2647_v49  ;;  %v553_v61 = vsel %vm550_vm5, %v547_v45, %v2646_v50  ;;  %v551_v62 = vsel %vm550_vm5, %v2647_v49, %v547_v45  ;;  %v2657_v2 = vunpack.i.h.bf16 %v2655_v48 }
 0x20a   : > { %v2650_v51 = vpop.permute.xlu1 %2649  ;;  %v2656_v3 = vunpack.i.l.bf16 %v2655_v48 }
 0x20b   : > { %v2652_v52 = vunpack.i.h.bf16 %v2650_v51  ;;  %v2651_v53 = vunpack.i.l.bf16 %v2650_v51 }
 0x20c   : > { %v569_v54 = vpop.permute.xlu0 %568  ;;  %v572_v13 = vsel %vm570_vm7, %v2656_v3, %v2657_v2 }
 0x20d   : > { %v562_v56 = vsel %vm560_vm6, %v2651_v53, %v2652_v52  ;;  %v571_v21 = vsel %vm570_vm7, %v2657_v2, %v569_v54  ;;  %v573_v22 = vsel %vm570_vm7, %v569_v54, %v2656_v3 }
 0x20e   : > { %v559_v57 = vpop.permute.xlu1 %558  ;;  %v2313_v58 = vpack.c.bf16 %v562_v56, %v552_v55 }
 0x20f   : > { %v561_v59 = vsel %vm560_vm6, %v2652_v52, %v559_v57  ;;  %v563_v60 = vsel %vm560_vm6, %v559_v57, %v2651_v53 }
 0x210   : > { %v2665_v63 = vpop.permute.xlu0 %2664  ;;  %2314 = vmatprep.subr.bf16.mxu0 %v2313_v58  ;;  %v2315_v0 = vpack.c.bf16 %v563_v60, %v553_v61  ;;  %v2329_v1 = vpack.c.bf16 %v561_v59, %v551_v62  ;;  %v541_v61 = vld [vmem:[%s3666_s10 + $0x8] sm:$0xff] }
 0x211   : > { %v2667_v4 = vunpack.i.h.bf16 %v2665_v63  ;;  %v2666_v5 = vunpack.i.l.bf16 %v2665_v63 }
 0x212   : > { %v2660_v6 = vpop.permute.xlu1 %2659  ;;  %2316 = vmatpush1.bf16.msra.mxu0 %v2315_v0  ;;  %2330 = vmatprep.subr.bf16.mxu1 %v2329_v1 }
 0x213   : > { %v2662_v7 = vunpack.i.h.bf16 %v2660_v6  ;;  %v2661_v8 = vunpack.i.l.bf16 %v2660_v6  ;;  %2332 = vmatpush3.bf16.msra.mxu1 %v2329_v1  ;;  %v591_v20 = vsel %vm590_vm9, %v2666_v5, %v2667_v4 }
 0x214   : > { %v2670_v9 = vpop.permute.xlu0 %2669  ;;  %v2321_v27 = vpack.c.bf16 %v591_v20, %v3726_v37 }
 0x215   : > { %v582_v17 = vsel %vm580_vm8, %v2661_v8, %v2662_v7  ;;  %v2672_v40 = vunpack.i.h.bf16 %v2670_v9  ;;  %v2671_v43 = vunpack.i.l.bf16 %v2670_v9 }
 0x216   : > { %v579_v18 = vpop.permute.xlu1 %578  ;;  %v2317_v19 = vpack.c.bf16 %v582_v17, %v572_v13 }
 0x217   : > { %v581_v23 = vsel %vm580_vm8, %v2662_v7, %v579_v18  ;;  %v583_v24 = vsel %vm580_vm8, %v579_v18, %v2661_v8  ;;  %v601_v48 = vsel %vm600_vm10, %v2671_v43, %v2672_v40 }
 0x218   : > { %v2319_v25 = vpack.c.bf16 %v583_v24, %v573_v22  ;;  %v2333_v26 = vpack.c.bf16 %v581_v23, %v571_v21  ;;  %2318 = vmatprep.subr.bf16.mxu0 %v2317_v19  ;;  %v595_v28 = vpop.permute.xlu0 %594 }
 0x219   : > { %v602_v50 = vsel %vm600_vm10, %v595_v28, %v2671_v43  ;;  %v603_v51 = vsel %vm600_vm10, %v2672_v40, %v595_v28 }
 0x21a   : > { %v585_v29 = vpop.permute.xlu1 %584  ;;  %2320 = vmatpush1.bf16.msra.mxu0 %v2319_v25  ;;  %2334 = vmatprep.subr.bf16.mxu1 %v2333_v26 }
 0x21b   : > { %v592_v30 = vsel %vm590_vm9, %v585_v29, %v2666_v5  ;;  %v593_v31 = vsel %vm590_vm9, %v2667_v4, %v585_v29  ;;  %2322 = vmatprep.subr.bf16.mxu0 %v2321_v27  ;;  %2336 = vmatpush3.bf16.msra.mxu1 %v2333_v26  ;;  %v3884_v29 = vld [vmem:[#allocation8] sm:$0xff] }
 0x21c   : > { %v2323_v32 = vpack.c.bf16 %v592_v30, %v3724_v36  ;;  %v2337_v39 = vpack.c.bf16 %v593_v31, %v3728_v38  ;;  %v617_v47 = vpop.permute.xlu0 %616  ;;  %v3886_v30 = vld [vmem:[#allocation8 + $0x8] sm:$0xff]  ;;  %v3295_v31 = vmov 0.0|0.0  }
 0x21e   : > { %v2675_v37 = vpop.permute.xlu1 %2674  ;;  %2324 = vmatpush1.bf16.msra.mxu0 %v2323_v32  ;;  %2338 = vmatprep.subr.bf16.mxu1 %v2337_v39  ;;  %v3909_v32 = vmax.f32 %v3718_v33, 0.0  ;;  %v3923_v33 = vmax.f32 %v3722_v35, 0.0 }
 0x21f   : > { %v2677_v44 = vunpack.i.h.bf16 %v2675_v37  ;;  %v2676_v45 = vunpack.i.l.bf16 %v2675_v37  ;;  %2340 = vmatpush3.bf16.msra.mxu1 %v2337_v39  ;;  %v3912_v39 = vmax.f32 %v3720_v34, 0.0  ;;  %v790_v34 = vld [vmem:[%s3673_s14 + $0x8] sm:$0xff] }
 0x220   : > { %v615_v56 = vpop.permute.xlu0 %614 }
 0x221   : > { %v611_v36 = vsel %vm610_vm11, %v2676_v45, %v2677_v44  ;;  %v622_v60 = vsel %vm620_vm12, %v615_v56, %v617_v47  ;;  %v2784_v40 = vpack.i.bf16 %v3912_v39, %v3909_v32  ;;  %v2819_v35 = vpack.i.bf16 %v3923_v33, %v3912_v39 }
 0x222   : > { %v605_v38 = vpop.permute.xlu1 %604  ;;  %v2325_v49 = vpack.c.bf16 %v611_v36, %v601_v48 }
 0x223   : > { %v612_v52 = vsel %vm610_vm11, %v605_v38, %v2676_v45  ;;  %v613_v53 = vsel %vm610_vm11, %v2677_v44, %v605_v38 }
 0x224   : > { %v2327_v54 = vpack.c.bf16 %v612_v52, %v602_v50  ;;  %v2341_v55 = vpack.c.bf16 %v613_v53, %v603_v51  ;;  %2326 = vmatprep.subr.bf16.mxu0 %v2325_v49 }
 0x226   : > { %v619_v57 = vpop.permute.xlu1 %618  ;;  %2328 = vmatpush1.bf16.msra.mxu0 %v2327_v54  ;;  %2342 = vmatprep.subr.bf16.mxu1 %v2341_v55 }
 0x227   : > { %2344 = vmatpush3.bf16.msra.mxu1 %v2341_v55  ;;  %v621_v58 = vsel %vm620_vm12, %v617_v47, %v619_v57  ;;  %v623_v59 = vsel %vm620_vm12, %v619_v57, %v615_v56 }
 0x228   : > { %647 = vmatprep.subr.mxu0 %v621_v58  ;;  %2277 = vmatprep.subr.mxu1 %v623_v59 }
 0x22a   : > { %648 = vmatpush1.msra.mxu0 %v622_v60 }
 0x22b   : > { %2185 = vmatmul.mubr.msk.f32.vlgmr.msra.gmra.mrb[0].mxu0 %vm624_vm4, %v3755_v41  ;;  %2278 = vmatpush3.msra.mxu1 %v623_v59 }
 0x22c   : > { %2280 = vmatmul.mubr.msk.f32.vlgmr.msra.gmra.mrb[0].mxu1 %vm624_vm4, %v541_v61  ;;  %701 = vmatprep.mubr.f32.mxu0 %v3293_v42 }
 0x22d   : > { %2282 = vmatprep.subr.mxu0 %v3701_v16  ;;  %944 = vmatprep.subr.mxu1 %v3698_v15 }
 0x22e   : > { %2283 = vmatpush3.msra.mxu0 %v3701_v16  ;;  %945 = vmatpush1.msra.mxu1 %v3695_v14 }
 0x22f   : > { %2186 = vmatmul.mubr.msk.f32.gmra.mrb[2].mxu0 %vm624_vm4, %v541_v61  ;;  %1008 = vmatprep.mubr.f32.mxu1 %v3293_v42 }
 0x230   : > { %2284 = vmatprep.mubr.msk.f32.mxu0 %vm937_vm13, %v3884_v29  ;;  %2381 = vmatprep.subr.bf16.mxu0 %v3295_v31 }
 0x231   : > { %v520_v63 = vpop.permute.xlu0 %519  ;;  %2189 = vmatmul.mubr.msk.f32.vlgmr.msra.gmra.mrb[2].mxu1 %vm937_vm13, %v3884_v29 }
 0x232   : > { %v3854_v14 = vsel %vm501_vm3, %v520_v63, -1e+30  ;;  %v3862_v9 = vsel %vm499_vm1, %v520_v63, -1e+30  ;;  %v3867_v18 = vsel %vm500_vm2, %v520_v63, -1e+30  ;;  %1014 = vmatprep.mubr.f32.mxu1 %v3293_v42 }
 0x233   : > { %2285 = vmatmul.mubr.msk.f32.vlgmr.msra.gmra.mrb[4].mxu0 %vm937_vm13, %v3886_v30 }
 0x234   : > { %2195 = vmatprep.mubr.msk.f32.mxu0 %vm1096_vm14, %v790_v34 }
 0x235   : > { %2190 = vmatmul.mubr.msk.f32.gmra.mrb[4].mxu1 %vm937_vm13, %v3886_v30 }
 0x236   : > { %2193 = vmatprep.mubr.msk.f32.mxu1 %vm1096_vm14, %v790_v34 }
 0x237   : > { %v515_v62 = vpop.permute.xlu1 %514 }
 0x238   : > { %v3842_v41 = vsel %vm499_vm1, %v515_v62, -1e+30  ;;  %v3846_v0 = vsel %vm500_vm2, %v515_v62, -1e+30  ;;  %v3850_v15 = vsel %vm501_vm3, %v515_v62, -1e+30 }
 0x2fe   : > { %v697_v1 = vpop.f32.mrb[0].mxu0 }
 0x2ff   : > { %v2281_v16 = vpop.f32.mrb[0].mxu1  ;;  %v699_v2 = vpop.f32.mrb[1].mxu0  ;;  %v698_v3 = vadd.f32 %v697_v1, %v3842_v41 }
 0x300   : > { %v780_v4 = vadd.f32 %v2281_v16, %v3854_v14  ;;  %v700_v5 = vadd.f32 %v699_v2, %v3846_v0  ;;  %v774_v6 = vpop.f32.mrb[1].mxu1 }
 0x301   : > { %v775_v7 = vadd.f32 %v774_v6, %v3850_v15  ;;  %v783_v20 = vmax.f32 %v698_v3, 0.0 }
 0x302   : > { %v788_v8 = vmax.f32 %v780_v4, 0.0  ;;  %v703_v13 = vpop.f32.mrb[2].mxu0  ;;  %v784_v21 = vmax.f32 %v700_v5, 0.0 }
 0x303   : > { %v785_v12 = vmax.f32 %v775_v7, 0.0  ;;  %v704_v17 = vadd.f32 %v703_v13, %v3862_v9  ;;  %v705_v19 = vpop.f32.mrb[3].mxu0 }
 0x304   : > { %v706_v22 = vadd.f32 %v705_v19, %v3867_v18 }
 0x305   : > { %v786_v23 = vmax.f32 %v704_v17, 0.0  ;;  %v2684_v24 = vpack.i.bf16 %v788_v8, %v785_v12  ;;  %v3876_v27 = vpack.c.bf16 %v788_v8, %v785_v12 }
 0x306   : > { %v787_v25 = vmax.f32 %v706_v22, 0.0 }
 0x307   : > { %2685 = vrot.lane.b32.xlu0 %v2684_v24, %s3288_s1  ;;  %2680 = vrot.lane.b32.xlu1 %v2684_v24, %s3286_s11  ;;  %v2714_v10 = vpack.i.bf16 %v786_v23, %v783_v20  ;;  %v3878_v28 = vpack.c.bf16 %v786_v23, %v783_v20 }
 0x308   : > { %v2734_v26 = vpack.i.bf16 %v787_v25, %v784_v21  ;;  %v3874_v11 = vpack.c.bf16 %v787_v25, %v784_v21 }
 0x30b   : > { %2695 = vrot.lane.b32.xlu0 %v2684_v24, %s3290_s8  ;;  %2690 = vrot.lane.b32.xlu1 %v2684_v24, %s3287_s29 }
 0x30f   : > { %2700 = vrot.lane.b32.xlu0 %v2684_v24, %s3289_s26  ;;  %2705 = vrot.lane.b32.xlu1 %v2684_v24, %s3291_s3 }
 0x313   : > { %2715 = vrot.lane.b32.xlu0 %v2714_v10, %s3288_s1  ;;  %2710 = vrot.lane.b32.xlu1 %v2714_v10, %s3286_s11 }
 0x317   : > { %2725 = vrot.lane.b32.xlu0 %v2714_v10, %s3290_s8  ;;  %2720 = vrot.lane.b32.xlu1 %v2714_v10, %s3287_s29 }
 0x31b   : > { %2735 = vrot.lane.b32.xlu0 %v2734_v26, %s3286_s11  ;;  %2730 = vrot.lane.b32.xlu1 %v2714_v10, %s3289_s26 }
 0x31f   : > { %2740 = vrot.lane.b32.xlu0 %v2714_v10, %s3291_s3  ;;  %2745 = vrot.lane.b32.xlu1 %v2734_v26, %s3288_s1 }
 0x323   : > { %2750 = vrot.lane.b32.xlu0 %v2734_v26, %s3287_s29  ;;  %2760 = vrot.lane.b32.xlu1 %v2714_v10, %s3294_s22 }
 0x327   : > { %2755 = vrot.lane.b32.xlu0 %v2684_v24, %s3294_s22  ;;  %2765 = vrot.lane.b32.xlu1 %v2684_v24, %s3292_s12 }
 0x32b   : > { %2770 = vrot.lane.b32.xlu0 %v2714_v10, %s3292_s12  ;;  %2775 = vrot.lane.b32.xlu1 %v2734_v26, %s3290_s8 }
 0x32f   : > { %2785 = vrot.lane.b32.xlu0 %v2784_v40, %s3288_s1  ;;  %2780 = vrot.lane.b32.xlu1 %v2784_v40, %s3286_s11 }
 0x333   : > { %2795 = vrot.lane.b32.xlu0 %v2734_v26, %s3291_s3  ;;  %2790 = vrot.lane.b32.xlu1 %v2734_v26, %s3289_s26 }
 0x337   : > { %1290 = vrot.lane.b32.xlu0 %v3923_v33, %s3288_s1  ;;  %1281 = vrot.lane.b32.xlu1 %v3923_v33, %s3286_s11 }
 0x33b   : > { %2810 = vrot.lane.b32.xlu0 %v2734_v26, %s3292_s12  ;;  %2800 = vrot.lane.b32.xlu1 %v2734_v26, %s3294_s22 }
 0x33f   : > { %2815 = vrot.lane.b32.xlu0 %v2784_v40, %s3290_s8  ;;  %2805 = vrot.lane.b32.xlu1 %v2784_v40, %s3287_s29 }
 0x343   : > { %1308 = vrot.lane.b32.xlu0 %v3923_v33, %s3290_s8  ;;  %1299 = vrot.lane.b32.xlu1 %v3923_v33, %s3287_s29 }
 0x347   : > { %1313 = vrot.lane.b32.xlu0 %v3909_v32, %s3289_s26  ;;  %2820 = vrot.lane.b32.xlu1 %v2819_v35, %s3289_s26 }
 0x34b   : > { %2830 = vrot.lane.b32.xlu0 %v2819_v35, %s3294_s22  ;;  %2825 = vrot.lane.b32.xlu1 %v2819_v35, %s3291_s3 }
 0x34f   : > { %1331 = vrot.lane.b32.xlu0 %v3909_v32, %s3294_s22  ;;  %1322 = vrot.lane.b32.xlu1 %v3909_v32, %s3291_s3 }
 0x353   : > { %1344 = vrot.lane.b32.xlu0 %v3923_v33, %s3292_s12  ;;  %1342 = vrot.lane.b32.xlu1 %v3912_v39, %s3292_s12 }
 0x357   : > { %1340 = vrot.lane.b32.xlu1 %v3909_v32, %s3292_s12 }
 0x379   : > { %v2686_v43 = vpop.permute.xlu0 %2685  ;;  %v2681_v37 = vpop.permute.xlu1 %2680 }
 0x37a   : > { %v2683_v55 = vunpack.i.h.bf16 %v2681_v37  ;;  %v2682_v56 = vunpack.i.l.bf16 %v2681_v37  ;;  %v2688_v59 = vunpack.i.h.bf16 %v2686_v43  ;;  %v2687_v62 = vunpack.i.l.bf16 %v2686_v43 }
 0x37d   : > { %v3957_v44 = vpop.permute.xlu0 %2695  ;;  %v2691_v45 = vpop.permute.xlu1 %2690 }
 0x37e   : > { %v2693_v35 = vunpack.i.h.bf16 %v2691_v45  ;;  %v2692_v43 = vunpack.i.l.bf16 %v2691_v45 }
 0x381   : > { %v3959_v47 = vpop.permute.xlu0 %2700  ;;  %v3961_v48 = vpop.permute.xlu1 %2705 }
 0x385   : > { %v2716_v36 = vpop.permute.xlu0 %2715  ;;  %v2711_v38 = vpop.permute.xlu1 %2710 }
 0x386   : > { %v2713_v51 = vunpack.i.h.bf16 %v2711_v38  ;;  %v2712_v52 = vunpack.i.l.bf16 %v2711_v38  ;;  %v2718_v60 = vunpack.i.h.bf16 %v2716_v36  ;;  %v2717_v61 = vunpack.i.l.bf16 %v2716_v36 }
 0x388   : > { %v810_v63 = vsel %vm550_vm5, %v2683_v55, %v2713_v51  ;;  %v809_v2 = vsel %vm550_vm5, %v2682_v56, %v2712_v52  ;;  %v828_v12 = vsel %vm560_vm6, %v2688_v59, %v2718_v60  ;;  %v827_v17 = vsel %vm560_vm6, %v2687_v62, %v2717_v61 }
 0x389   : > { %v3963_v49 = vpop.permute.xlu0 %2725  ;;  %v2721_v50 = vpop.permute.xlu1 %2720  ;;  %v2347_v20 = vpack.c.bf16 %v810_v63, %v809_v2  ;;  %v2351_v38 = vpack.c.bf16 %v828_v12, %v827_v17  ;;  %v2698_v2 = vunpack.i.h.bf16 %v3957_v44 }
 0x38a   : > { %v2723_v21 = vunpack.i.h.bf16 %v2721_v50  ;;  %v2722_v24 = vunpack.i.l.bf16 %v2721_v50  ;;  %v2727_v63 = vunpack.i.l.bf16 %v3963_v49 }
 0x38d   : > { %v2736_v53 = vpop.permute.xlu0 %2735  ;;  %v3965_v54 = vpop.permute.xlu1 %2730 }
 0x38e   : > { %v2738_v57 = vunpack.i.h.bf16 %v2736_v53  ;;  %v2737_v58 = vunpack.i.l.bf16 %v2736_v53 }
 0x390   : > { %v806_v1 = vsel %vm550_vm5, %v2738_v57, %v2683_v55  ;;  %v805_v16 = vsel %vm550_vm5, %v2737_v58, %v2682_v56  ;;  %v807_v6 = vsel %vm550_vm5, %v2712_v52, %v2737_v58  ;;  %v808_v7 = vsel %vm550_vm5, %v2713_v51, %v2738_v57 }
 0x391   : > { %v2382_v3 = vpack.c.bf16 %v806_v1, %v805_v16  ;;  %v3975_v4 = vpop.permute.xlu0 %2740  ;;  %v2746_v5 = vpop.permute.xlu1 %2745  ;;  %v2345_v19 = vpack.c.bf16 %v808_v7, %v807_v6  ;;  %v846_v55 = vsel %vm570_vm7, %v2693_v35, %v2723_v21  ;;  %v845_v56 = vsel %vm570_vm7, %v2692_v43, %v2722_v24 }
 0x392   : > { %v2748_v8 = vunpack.i.h.bf16 %v2746_v5  ;;  %v2747_v13 = vunpack.i.l.bf16 %v2746_v5 }
 0x393   : > { %2383 = vmatpush1.bf16.msra.mxu0 %v2382_v3  ;;  %2346 = vmatprep.subr.bf16.mxu1 %v2345_v19  ;;  %v2697_v3 = vunpack.i.l.bf16 %v3957_v44 }
 0x394   : > { %v824_v22 = vsel %vm560_vm6, %v2748_v8, %v2688_v59  ;;  %v823_v23 = vsel %vm560_vm6, %v2747_v13, %v2687_v62  ;;  %2384 = vmatprep.subr.bf16.mxu0 %v3295_v31  ;;  %v825_v40 = vsel %vm560_vm6, %v2717_v61, %v2747_v13  ;;  %v826_v34 = vsel %vm560_vm6, %v2718_v60, %v2748_v8 }
 0x395   : > { %v2385_v25 = vpack.c.bf16 %v824_v22, %v823_v23  ;;  %v2751_v10 = vpop.permute.xlu0 %2750  ;;  %v3990_v26 = vpop.permute.xlu1 %2760  ;;  %2348 = vmatpush1.bf16.msra.mxu1 %v2347_v20  ;;  %v2349_v51 = vpack.c.bf16 %v826_v34, %v825_v40  ;;  %v2728_v61 = vunpack.i.h.bf16 %v3963_v49  ;;  %v2355_v62 = vpack.c.bf16 %v846_v55, %v845_v56 }
 0x396   : > { %v2753_v37 = vunpack.i.h.bf16 %v2751_v10  ;;  %v2752_v36 = vunpack.i.l.bf16 %v2751_v10  ;;  %v863_v49 = vsel %vm580_vm8, %v2697_v3, %v2727_v63  ;;  %v2732_v22 = vunpack.i.l.bf16 %v3965_v54 }
 0x397   : > { %2386 = vmatpush1.bf16.msra.mxu0 %v2385_v25  ;;  %2350 = vmatprep.subr.bf16.mxu1 %v2349_v51  ;;  %v864_v7 = vsel %vm580_vm8, %v2698_v2, %v2728_v61  ;;  %v2743_v23 = vunpack.i.h.bf16 %v3975_v4  ;;  %v2703_v10 = vunpack.i.h.bf16 %v3959_v47  ;;  %v2702_v40 = vunpack.i.l.bf16 %v3959_v47 }
 0x398   : > { %v842_v50 = vsel %vm570_vm7, %v2753_v37, %v2693_v35  ;;  %v841_v52 = vsel %vm570_vm7, %v2752_v36, %v2692_v43  ;;  %2387 = vmatprep.subr.bf16.mxu0 %v3295_v31  ;;  %v843_v53 = vsel %vm570_vm7, %v2722_v24, %v2752_v36  ;;  %v844_v45 = vsel %vm570_vm7, %v2723_v21, %v2753_v37 }
 0x399   : > { %v2388_v57 = vpack.c.bf16 %v842_v50, %v841_v52  ;;  %v4009_v58 = vpop.permute.xlu0 %2755  ;;  %v4011_v59 = vpop.permute.xlu1 %2765  ;;  %v2353_v60 = vpack.c.bf16 %v844_v45, %v843_v53  ;;  %2352 = vmatpush1.bf16.msra.mxu1 %v2351_v38  ;;  %v2733_v21 = vunpack.i.h.bf16 %v3965_v54  ;;  %v2742_v24 = vunpack.i.l.bf16 %v3975_v4 }
 0x39a   : > { %v2359_v34 = vpack.c.bf16 %v864_v7, %v863_v49  ;;  %v2708_v35 = vunpack.i.h.bf16 %v3961_v48  ;;  %v2707_v43 = vunpack.i.l.bf16 %v3961_v48  ;;  %v881_v4 = vsel %vm590_vm9, %v2702_v40, %v2732_v22 }
 0x39b   : > { %2354 = vmatprep.subr.bf16.mxu1 %v2353_v60  ;;  %2389 = vmatpush1.bf16.msra.mxu0 %v2388_v57  ;;  %v882_v36 = vsel %vm590_vm9, %v2703_v10, %v2733_v21  ;;  %v2758_v48 = vunpack.i.h.bf16 %v4009_v58  ;;  %v2757_v53 = vunpack.i.l.bf16 %v4009_v58 }
 0x39c   : > { %2390 = vmatprep.subr.bf16.mxu0 %v3295_v31  ;;  %v900_v47 = vsel %vm600_vm10, %v2708_v35, %v2743_v23  ;;  %v899_v50 = vsel %vm600_vm10, %v2707_v43, %v2742_v24  ;;  %v2397_v57 = vpack.c.bf16 %v882_v36, %v881_v4 }
 0x39d   : > { %v4016_v1 = vpop.permute.xlu0 %2770  ;;  %v2776_v16 = vpop.permute.xlu1 %2775  ;;  %2356 = vmatpush1.bf16.msra.mxu1 %v2355_v62  ;;  %v2400_v58 = vpack.c.bf16 %v900_v47, %v899_v50 }
 0x39e   : > { %v2778_v5 = vunpack.i.h.bf16 %v2776_v16  ;;  %v2777_v6 = vunpack.i.l.bf16 %v2776_v16  ;;  %v2772_v60 = vunpack.i.l.bf16 %v4016_v1  ;;  %v2762_v16 = vunpack.i.l.bf16 %v3990_v26 }
 0x3a0   : > { %v860_v8 = vsel %vm580_vm8, %v2778_v5, %v2698_v2  ;;  %v859_v13 = vsel %vm580_vm8, %v2777_v6, %v2697_v3  ;;  %v861_v44 = vsel %vm580_vm8, %v2727_v63, %v2777_v6  ;;  %v862_v20 = vsel %vm580_vm8, %v2728_v61, %v2778_v5 }
 0x3a1   : > { %v2391_v12 = vpack.c.bf16 %v860_v8, %v859_v13  ;;  %v4028_v17 = vpop.permute.xlu0 %2785  ;;  %v4030_v19 = vpop.permute.xlu1 %2780  ;;  %v2357_v25 = vpack.c.bf16 %v862_v20, %v861_v44  ;;  %v2763_v63 = vunpack.i.h.bf16 %v3990_v26  ;;  %v2767_v3 = vunpack.i.l.bf16 %v4011_v59 }
 0x3a2   : > { %v2773_v5 = vunpack.i.h.bf16 %v4016_v1  ;;  %v917_v8 = vsel %vm610_vm11, %v2757_v53, %v2762_v16  ;;  %v2768_v26 = vunpack.i.h.bf16 %v4011_v59  ;;  %v2783_v59 = vunpack.i.h.bf16 %v4030_v19 }
 0x3a3   : > { %2392 = vmatpush1.bf16.msra.mxu0 %v2391_v12  ;;  %2358 = vmatprep.subr.bf16.mxu1 %v2357_v25  ;;  %v918_v13 = vsel %vm610_vm11, %v2758_v48, %v2763_v63  ;;  %v935_v1 = vsel %vm620_vm12, %v2767_v3, %v2772_v60 }
 0x3a4   : > { %2393 = vmatprep.subr.bf16.mxu0 %v3295_v31  ;;  %2360 = vmatpush1.bf16.msra.mxu1 %v2359_v34  ;;  %v2788_v34 = vunpack.i.h.bf16 %v4028_v17 }
 0x3a5   : > { %v2796_v37 = vpop.permute.xlu0 %2795  ;;  %v2791_v54 = vpop.permute.xlu1 %2790  ;;  %2362 = vmatprep.subr.bf16.mxu1 %v3874_v11 }
 0x3a6   : > { %v2793_v38 = vunpack.i.h.bf16 %v2791_v54  ;;  %v2792_v51 = vunpack.i.l.bf16 %v2791_v54  ;;  %v2797_v52 = vunpack.i.l.bf16 %v2796_v37  ;;  %v2798_v45 = vunpack.i.h.bf16 %v2796_v37 }
 0x3a7   : > { %2395 = vmatpush1.bf16.msra.mxu0 %v3876_v27  ;;  %v2403_v54 = vpack.c.bf16 %v918_v13, %v917_v8  ;;  %v789_v8 = vld [vmem:[%s3673_s14] sm:$0xff] }
 0x3a8   : > { %v879_v55 = vsel %vm590_vm9, %v2732_v22, %v2792_v51  ;;  %v880_v56 = vsel %vm590_vm9, %v2733_v21, %v2793_v38  ;;  %2396 = vmatprep.subr.bf16.mxu0 %v3295_v31  ;;  %v877_v11 = vsel %vm590_vm9, %v2792_v51, %v2702_v40  ;;  %v878_v27 = vsel %vm590_vm9, %v2793_v38, %v2703_v10 }
 0x3a9   : > { %v4063_v61 = vpop.permute.xlu0 %1290  ;;  %v4065_v62 = vpop.permute.xlu1 %1281  ;;  %v2367_v2 = vpack.c.bf16 %v880_v56, %v879_v55  ;;  %2364 = vmatpush1.bf16.msra.mxu1 %v3878_v28  ;;  %v2365_v6 = vpack.c.bf16 %v878_v27, %v877_v11  ;;  %v895_v7 = vsel %vm600_vm10, %v2797_v52, %v2707_v43  ;;  %v896_v28 = vsel %vm600_vm10, %v2798_v45, %v2708_v35 }
 0x3aa   : > { %v897_v49 = vsel %vm600_vm10, %v2742_v24, %v2797_v52  ;;  %v898_v12 = vsel %vm600_vm10, %v2743_v23, %v2798_v45  ;;  %v2369_v21 = vpack.c.bf16 %v896_v28, %v895_v7  ;;  %v2782_v22 = vunpack.i.l.bf16 %v4030_v19 }
 0x3ab   : > { %2398 = vmatpush1.bf16.msra.mxu0 %v2397_v57  ;;  %2366 = vmatprep.subr.bf16.mxu1 %v2365_v6  ;;  %v936_v40 = vsel %vm620_vm12, %v2768_v26, %v2773_v5  ;;  %v2787_v23 = vunpack.i.l.bf16 %v4028_v17  ;;  %v2371_v43 = vpack.c.bf16 %v898_v12, %v897_v49  ;;  %v1292_v17 = vsel %vm560_vm6, %v2788_v34, %v4063_v61 }
 0x3ac   : > { %2399 = vmatprep.subr.bf16.mxu0 %v3295_v31  ;;  %v2406_v47 = vpack.c.bf16 %v936_v40, %v935_v1  ;;  %v1284_v52 = vsel %vm550_vm5, %v2782_v22, %v2783_v59  ;;  %v1283_v45 = vsel %vm550_vm5, %v2783_v59, %v4065_v62  ;;  %v1285_v1 = vsel %vm550_vm5, %v4065_v62, %v2782_v22  ;;  %v791_v22 = vld [vmem:[%s3673_s14 + $0x10] sm:$0xff] }
 0x3ad   : > { %v2811_v44 = vpop.permute.xlu0 %2810  ;;  %v2801_v20 = vpop.permute.xlu1 %2800  ;;  %2368 = vmatpush1.bf16.msra.mxu1 %v2367_v2  ;;  %v1293_v27 = vsel %vm560_vm6, %v2787_v23, %v2788_v34  ;;  %v2424_v7 = vpack.c.bf16 %v1292_v17, %v1283_v45  ;;  %v1294_v28 = vsel %vm560_vm6, %v4063_v61, %v2787_v23 }
 0x3ae   : > { %v2803_v25 = vunpack.i.h.bf16 %v2801_v20  ;;  %v2802_v10 = vunpack.i.l.bf16 %v2801_v20  ;;  %v2813_v24 = vunpack.i.h.bf16 %v2811_v44  ;;  %v2812_v35 = vunpack.i.l.bf16 %v2811_v44  ;;  %2370 = vmatprep.subr.bf16.mxu1 %v2369_v21  ;;  %v792_v44 = vld [vmem:[%s3673_s14 + $0x18] sm:$0xff] }
 0x3af   : > { %2401 = vmatpush1.bf16.msra.mxu0 %v2400_v58  ;;  %v2410_v61 = vpack.c.bf16 %v1294_v28, %v1285_v1 }
 0x3b0   : > { %v915_v37 = vsel %vm610_vm11, %v2762_v16, %v2802_v10  ;;  %v916_v19 = vsel %vm610_vm11, %v2763_v63, %v2803_v25  ;;  %2402 = vmatprep.subr.bf16.mxu0 %v3295_v31  ;;  %v913_v38 = vsel %vm610_vm11, %v2802_v10, %v2757_v53  ;;  %v914_v51 = vsel %vm610_vm11, %v2803_v25, %v2758_v48 }
 0x3b1   : > { %v2816_v36 = vpop.permute.xlu0 %2815  ;;  %v2806_v4 = vpop.permute.xlu1 %2805  ;;  %v2375_v50 = vpack.c.bf16 %v916_v19, %v915_v37  ;;  %2372 = vmatpush1.bf16.msra.mxu1 %v2371_v43  ;;  %v2373_v55 = vpack.c.bf16 %v914_v51, %v913_v38  ;;  %v931_v53 = vsel %vm620_vm12, %v2812_v35, %v2767_v3  ;;  %v932_v48 = vsel %vm620_vm12, %v2813_v24, %v2768_v26  ;;  %v2200_v19 = vld [vmem:[%s3666_s10 + $0x10] sm:$0xff] }
 0x3b2   : > { %v933_v56 = vsel %vm620_vm12, %v2772_v60, %v2812_v35  ;;  %v934_v57 = vsel %vm620_vm12, %v2773_v5, %v2813_v24  ;;  %v2818_v11 = vunpack.i.h.bf16 %v2816_v36  ;;  %v2817_v58 = vunpack.i.l.bf16 %v2816_v36 }
 0x3b3   : > { %2404 = vmatpush1.bf16.msra.mxu0 %v2403_v54  ;;  %v2808_v63 = vunpack.i.h.bf16 %v2806_v4  ;;  %v2807_v16 = vunpack.i.l.bf16 %v2806_v4  ;;  %2374 = vmatprep.subr.bf16.mxu1 %v2373_v55  ;;  %v2377_v6 = vpack.c.bf16 %v932_v48, %v931_v53  ;;  %v2379_v13 = vpack.c.bf16 %v934_v57, %v933_v56 }
 0x3b4   : > { %2405 = vmatprep.subr.bf16.mxu0 %v3295_v31  ;;  %v2408_v26 = vpack.c.bf16 %v1293_v27, %v1284_v52  ;;  %v1311_v21 = vsel %vm580_vm8, %v2817_v58, %v2818_v11 }
 0x3b5   : > { %v1309_v2 = vpop.permute.xlu0 %1308  ;;  %v1300_v3 = vpop.permute.xlu1 %1299  ;;  %2376 = vmatpush1.bf16.msra.mxu1 %v2375_v50  ;;  %v1302_v20 = vsel %vm570_vm7, %v2807_v16, %v2808_v63 }
 0x3b6   : > { %v1310_v60 = vsel %vm580_vm8, %v2818_v11, %v1309_v2  ;;  %v1301_v5 = vsel %vm570_vm7, %v2808_v63, %v1300_v3  ;;  %2378 = vmatprep.subr.bf16.mxu1 %v2377_v6  ;;  %v2412_v62 = vpack.c.bf16 %v1311_v21, %v1302_v20  ;;  %v1312_v34 = vsel %vm580_vm8, %v1309_v2, %v2817_v58 }
 0x3b7   : > { %2407 = vmatpush1.bf16.msra.mxu0 %v2406_v47  ;;  %v2428_v59 = vpack.c.bf16 %v1310_v60, %v1301_v5  ;;  %v1303_v24 = vsel %vm570_vm7, %v1300_v3, %v2807_v16  ;;  %v2201_v3 = vld [vmem:[%s3666_s10 + $0x18] sm:$0xff]  ;;  %s3191_s10 = sshll.u32 %s3296_s15, 4  ;;  %s3192_s10 = int_to_ptr.vmem [resolvable:$false] %s3191_s10 }
 0x3b8   : > { %2425 = vmatprep.subr.bf16.mxu0 %v2424_v7  ;;  %v2414_v51 = vpack.c.bf16 %v1312_v34, %v1303_v24  ;;  %v2955_v60 = vld [vmem:[%s3658_s21 + $0x18] sm:$0xff]  ;;  %v2956_v5 = vld [vmem:[%s3658_s21 + $0x28] sm:$0xff]  ;;  %s3193_s27 = scalar_lea.vmem %s3192_s10, 3072  ;;  %p3194_p9 = scmp.lt.s32.totalorder %s4382_s17, %s3192_s10 }
 0x3b9   : > { %v1314_v49 = vpop.permute.xlu0 %1313  ;;  %v2821_v12 = vpop.permute.xlu1 %2820  ;;  %2380 = vmatpush1.bf16.msra.mxu1 %v2379_v13  ;;  %p3195_p12 = scmp.lt.s32.totalorder %s3193_s27, %s3187_s25 }
 0x3ba   : > { %v2823_v25 = vunpack.i.h.bf16 %v2821_v12  ;;  %v2822_v10 = vunpack.i.l.bf16 %v2821_v12  ;;  %1245 = vmatmul.mubr.f32.vlgmr.msra.gmra.mrb[6].mxu0 %v789_v8  ;;  %2409 = vmatprep.subr.bf16.mxu1 %v2408_v26 }
 0x3bb   : > { %2427 = vmatpush3.bf16.msra.mxu0 %v2424_v7  ;;  %2196 = vmatprep.mubr.msk.f32.mxu0 %vm1096_vm14, %v792_v44  ;;  %v2954_v7 = vld [vmem:[%s3658_s21 + $0x20] sm:$0xff]  ;;  %s4499_s21 = sld [smem:[#allocation32_spill]]  ;;  %p3196_p4 = por %p3195_p12, %p3194_p9 }
 0x3bc   : > { %2429 = vmatprep.subr.bf16.mxu0 %v2428_v59  ;;  %v1321_v40 = vsel %vm590_vm9, %v2823_v25, %v1314_v49  ;;  %1168 = vmatmul.mubr.f32.vlgmr.msra.gmra.mrb[2].mxu1 %v789_v8  ;;  %v1319_v37 = vsel %vm590_vm9, %v2822_v10, %v2823_v25  ;;  %v2286_v8 = vpop.f32.mrb[4].mxu0 }
 0x3bd   : > { %v2831_v35 = vpop.permute.xlu0 %2830  ;;  %v2826_v23 = vpop.permute.xlu1 %2825  ;;  %v2432_v43 = vpack.c.bf16 %v1321_v40, %v3923_v33  ;;  %2411 = vmatpush1.bf16.msra.mxu1 %v2410_v61  ;;  %2194 = vmatprep.mubr.msk.f32.mxu1 %vm1096_vm14, %v792_v44  ;;  %v1320_v33 = vsel %vm590_vm9, %v1314_v49, %v2822_v10  ;;  %v2416_v50 = vpack.c.bf16 %v1319_v37, %v3912_v39  ;;  %p3197_p10 = pnand %p3196_p4, %p3190_p7 }
 0x3be   : > { %v2833_v54 = vunpack.i.h.bf16 %v2831_v35  ;;  %v2832_v36 = vunpack.i.l.bf16 %v2831_v35  ;;  %v2828_v4 = vunpack.i.h.bf16 %v2826_v23  ;;  %v2827_v38 = vunpack.i.l.bf16 %v2826_v23  ;;  %2413 = vmatprep.subr.bf16.mxu1 %v2412_v62  ;;  %1250 = vmatmul.mubr.f32.gmra.mrb[8].mxu0 %v791_v22  ;;  %v1087_v13 = vpop.f32.mrb[5].mxu0 }
 0x3bf   : > { %2431 = vmatpush3.bf16.msra.mxu0 %v2428_v59  ;;  %2305 = vmatprep.mubr.msk.f32.mxu0 %vm624_vm4, %v2200_v19  ;;  %v2418_v56 = vpack.c.bf16 %v1320_v33, %v3909_v32 }
 0x3c0   : > { %1174 = vmatmul.mubr.f32.gmra.mrb[4].mxu1 %v791_v22  ;;  %2433 = vmatprep.subr.bf16.mxu0 %v2432_v43  ;;  %v1328_v55 = vsel %vm600_vm10, %v2827_v38, %v2828_v4  ;;  %v1337_v53 = vsel %vm610_vm11, %v2832_v36, %v2833_v54 }
 0x3c1   : > { %v1332_v47 = vpop.permute.xlu0 %1331  ;;  %v1323_v17 = vpop.permute.xlu1 %1322  ;;  %2415 = vmatpush1.bf16.msra.mxu1 %v2414_v51  ;;  %1419 = vmatprep.mubr.f32.mxu1 %v3293_v42  ;;  %v2420_v27 = vpack.c.bf16 %v1337_v53, %v1328_v55  ;;  %s4380_s13 = scalar_lea.hbm %s4499_s21, %s2515_s5 }
 0x3c2   : > { %v1339_v52 = vsel %vm610_vm11, %v2833_v54, %v1332_v47  ;;  %v1330_v45 = vsel %vm600_vm10, %v2828_v4, %v1323_v17  ;;  %2417 = vmatprep.subr.bf16.mxu1 %v2416_v50  ;;  %v1338_v39 = vsel %vm610_vm11, %v1332_v47, %v2832_v36  ;;  %v1329_v57 = vsel %vm600_vm10, %v1323_v17, %v2827_v38 }
 0x3c3   : > { %v2436_v48 = vpack.c.bf16 %v1339_v52, %v1330_v45  ;;  %2435 = vmatpush3.bf16.msra.mxu0 %v2432_v43  ;;  %v2422_v63 = vpack.c.bf16 %v1338_v39, %v1329_v57 }
 0x3c5   : > { %v1343_v11 = vpop.permute.xlu1 %1342  ;;  %2437 = vmatprep.subr.bf16.mxu0 %v2436_v48  ;;  %2419 = vmatpush1.bf16.msra.mxu1 %v2418_v56  ;;  %v1345_v58 = vpop.permute.xlu0 %1344 }
 0x3c6   : > { %2421 = vmatprep.subr.bf16.mxu1 %v2420_v27  ;;  %v1346_v32 = vsel %vm620_vm12, %v1343_v11, %v1345_v58 }
 0x3c7   : > { %2439 = vmatpush3.bf16.msra.mxu0 %v2436_v48 }
 0x3c9   : > { %v1341_v16 = vpop.permute.xlu1 %1340  ;;  %2423 = vmatpush1.bf16.msra.mxu1 %v2422_v63 }
 0x3ca   : > { %v1348_v2 = vsel %vm620_vm12, %v1345_v58, %v1341_v16  ;;  %v1347_v6 = vsel %vm620_vm12, %v1341_v16, %v1343_v11  ;;  %1371 = vmatprep.subr.mxu1 %v1346_v32 }
 0x3cb   : > { %2303 = vmatprep.subr.mxu0 %v1348_v2 }
 0x3cc   : > { %2304 = vmatpush3.msra.mxu0 %v1348_v2 }
 0x3cd   : > { %2306 = vmatmul.mubr.msk.f32.vlgmr.msra.gmra.mrb[10].mxu0 %vm624_vm4, %v2201_v3  ;;  %1662 = vmatprep.subr.mxu0 %v2954_v7 }
 0x3ce   : > { %1372 = vmatpush1.msra.mxu1 %v1347_v6  ;;  %1663 = vmatpush1.msra.mxu0 %v2955_v60 }
 0x3cf   : > { %2202 = vmatmul.mubr.msk.f32.vlgmr.msra.gmra.mrb[6].mxu1 %vm624_vm4, %v2200_v19  ;;  %2308 = vmatprep.subr.mxu1 %v2956_v5 }
 0x3d0   : > { %1425 = vmatprep.mubr.f32.mxu1 %v3293_v42  ;;  %2309 = vmatpush3.msra.mxu1 %v2956_v5 }
 0x3d1   : > { %2476 = vmatprep.subr.bf16.mxu1 %v3295_v31  ;;  %1726 = vmatprep.mubr.f32.mxu0 %v3293_v42 }
 0x3d2   : > { %2210 = vmatmul.mubr.msk.f32.vlgmr.msra.gmra.mrb[12].mxu0 %vm937_vm13, %v3884_v29 }
 0x3d3   : > { %2203 = vmatmul.mubr.msk.f32.gmra.mrb[8].mxu1 %vm624_vm4, %v2201_v3  ;;  %1732 = vmatprep.mubr.f32.mxu0 %v3293_v42 }
 0x3d4   : > { %2310 = vmatprep.mubr.msk.f32.mxu1 %vm937_vm13, %v3884_v29 }
 0x3d6   : > { %2211 = vmatmul.mubr.msk.f32.gmra.mrb[14].mxu0 %vm937_vm13, %v3886_v30 }
 0x3d7   : > { %2311 = vmatmul.mubr.msk.f32.vlgmr.msra.gmra.mrb[10].mxu1 %vm937_vm13, %v3886_v30 }
 0x48d   : > { %v1246_v26 = vpop.f32.mrb[6].mxu0 }
 0x48e   : > { %v1247_v28 = vadd.f32 %v1246_v26, %v1087_v13  ;;  %v1248_v1 = vpop.f32.mrb[7].mxu0 }
 0x48f   : > { %v1169_v42 = vpop.f32.mrb[2].mxu1 }
 0x490   : > { %1257 = vst [vmem:[%s4199_s24 + $0x10] sm:$0xff] %v1247_v28  ;;  %1255 = vst [vmem:[%s4199_s24] sm:$0xff] %v1169_v42  ;;  %v1171_v29 = vpop.f32.mrb[3].mxu1 }
 0x491   : > { %1256 = vst [vmem:[%s4199_s24 + $0x8] sm:$0xff] %v1171_v29  ;;  %v1251_v30 = vpop.f32.mrb[8].mxu0 }
 0x492   : > { %v1252_v49 = vadd.f32 %v2286_v8, %v1251_v30  ;;  %v1253_v12 = vpop.f32.mrb[9].mxu0 }
 0x493   : > { %v1175_v44 = vpop.f32.mrb[4].mxu1 }
 0x494   : > { %1260 = vst [vmem:[%s4199_s24 + $0x28] sm:$0xff] %v1252_v49  ;;  %1258 = vst [vmem:[%s4199_s24 + $0x18] sm:$0xff] %v1175_v44  ;;  %v1177_v20 = vpop.f32.mrb[5].mxu1 }
 0x495   : > { %1259 = vst [vmem:[%s4199_s24 + $0x20] sm:$0xff] %v1177_v20 }
 0x4a0   : > { %v2307_v21 = vpop.f32.mrb[10].mxu0 }
 0x4a1   : > { %v1504_v59 = vadd.f32 %v2307_v21, %v3854_v14  ;;  %v1498_v25 = vpop.f32.mrb[11].mxu0 }
 0x4a2   : > { %v1421_v10 = vpop.f32.mrb[6].mxu1  ;;  %v1499_v61 = vadd.f32 %v1498_v25, %v3850_v15 }
 0x4a3   : > { %v1512_v62 = vmax.f32 %v1504_v59, 0.0  ;;  %v1423_v22 = vpop.f32.mrb[7].mxu1  ;;  %v1422_v34 = vadd.f32 %v1421_v10, %v3842_v41 }
 0x4a4   : > { %v1509_v40 = vmax.f32 %v1499_v61, 0.0  ;;  %v1424_v24 = vadd.f32 %v1423_v22, %v3846_v0 }
 0x4a5   : > { %v1507_v14 = vmax.f32 %v1422_v34, 0.0 }
 0x4a6   : > { %v1427_v35 = vpop.f32.mrb[8].mxu1  ;;  %v2839_v23 = vpack.i.bf16 %v1512_v62, %v1509_v40  ;;  %v4215_v54 = vpack.c.bf16 %v1512_v62, %v1509_v40  ;;  %v1508_v36 = vmax.f32 %v1424_v24, 0.0 }
 0x4a7   : > { %v1428_v43 = vadd.f32 %v1427_v35, %v3862_v9  ;;  %v1429_v37 = vpop.f32.mrb[9].mxu1 }
 0x4a8   : > { %v1430_v19 = vadd.f32 %v1429_v37, %v3867_v18  ;;  %2840 = vrot.lane.b32.xlu1 %v2839_v23, %s3288_s1  ;;  %2835 = vrot.lane.b32.xlu0 %v2839_v23, %s3286_s11  ;;  %v2207_v18 = vld [vmem:[%s3673_s14 + $0x28] sm:$0xff] }
 0x4a9   : > { %v1510_v15 = vmax.f32 %v1428_v43, 0.0  ;;  %2216 = vmatprep.mubr.msk.f32.mxu1 %vm1096_vm14, %v2207_v18  ;;  %2214 = vmatprep.mubr.msk.f32.mxu0 %vm1096_vm14, %v2207_v18 }
 0x4aa   : > { %v1511_v4 = vmax.f32 %v1430_v19, 0.0  ;;  %v4246_v51 = vpop.f32.mrb[10].mxu1 }
 0x4ab   : > { %v2854_v41 = vpack.i.bf16 %v1510_v15, %v1507_v14  ;;  %v4221_v38 = vpack.c.bf16 %v1510_v15, %v1507_v14  ;;  %v4248_v33 = vpop.f32.mrb[11].mxu1 }
 0x4ac   : > { %2845 = vrot.lane.b32.xlu0 %v2839_v23, %s3287_s29  ;;  %v2869_v0 = vpack.i.bf16 %v1511_v4, %v1508_v36  ;;  %v4219_v9 = vpack.c.bf16 %v1511_v4, %v1508_v36 }
 0x4ad   : > { %2855 = vrot.lane.b32.xlu1 %v2854_v41, %s3288_s1 }
 0x4b0   : > { %2850 = vrot.lane.b32.xlu0 %v2854_v41, %s3286_s11 }
 0x4b1   : > { %2865 = vrot.lane.b32.xlu1 %v2854_v41, %s3290_s8 }
 0x4b4   : > { %2860 = vrot.lane.b32.xlu0 %v2854_v41, %s3287_s29 }
 0x4b5   : > { %2870 = vrot.lane.b32.xlu1 %v2869_v0, %s3286_s11 }
 0x4b8   : > { %2880 = vrot.lane.b32.xlu0 %v2869_v0, %s3288_s1 }
 0x4b9   : > { %2875 = vrot.lane.b32.xlu1 %v2839_v23, %s3290_s8 }
 0x4bc   : > { %2885 = vrot.lane.b32.xlu0 %v2854_v41, %s3289_s26 }
 0x4bd   : > { %2890 = vrot.lane.b32.xlu1 %v2869_v0, %s3287_s29 }
 0x4c0   : > { %2895 = vrot.lane.b32.xlu0 %v2869_v0, %s3290_s8 }
 0x4c1   : > { %2905 = vrot.lane.b32.xlu1 %v2854_v41, %s3291_s3 }
 0x4c4   : > { %2900 = vrot.lane.b32.xlu0 %v2839_v23, %s3289_s26 }
 0x4c5   : > { %2910 = vrot.lane.b32.xlu1 %v2839_v23, %s3291_s3 }
 0x4c8   : > { %2915 = vrot.lane.b32.xlu0 %v2854_v41, %s3294_s22 }
 0x4c9   : > { %2920 = vrot.lane.b32.xlu1 %v2869_v0, %s3289_s26 }
 0x4cc   : > { %2925 = vrot.lane.b32.xlu0 %v2869_v0, %s3291_s3 }
 0x4cd   : > { %2935 = vrot.lane.b32.xlu1 %v2854_v41, %s3292_s12 }
 0x4d0   : > { %2930 = vrot.lane.b32.xlu0 %v2839_v23, %s3294_s22 }
 0x4d1   : > { %2940 = vrot.lane.b32.xlu1 %v2869_v0, %s3294_s22 }
 0x4d4   : > { %2945 = vrot.lane.b32.xlu0 %v2869_v0, %s3292_s12 }
 0x4d5   : > { %2950 = vrot.lane.b32.xlu1 %v2839_v23, %s3292_s12 }
 0x51a   : > { %v2841_v47 = vpop.permute.xlu1 %2840  ;;  %v2836_v17 = vpop.permute.xlu0 %2835 }
 0x51b   : > { %v2843_v11 = vunpack.i.h.bf16 %v2841_v47  ;;  %v2838_v27 = vunpack.i.h.bf16 %v2836_v17  ;;  %v2837_v58 = vunpack.i.l.bf16 %v2836_v17  ;;  %v2842_v16 = vunpack.i.l.bf16 %v2841_v47 }
 0x51e   : > { %v2846_v50 = vpop.permute.xlu0 %2845 }
 0x51f   : > { %v2856_v52 = vpop.permute.xlu1 %2855  ;;  %v2848_v22 = vunpack.i.h.bf16 %v2846_v50  ;;  %v2847_v40 = vunpack.i.l.bf16 %v2846_v50 }
 0x520   : > { %v2858_v53 = vunpack.i.h.bf16 %v2856_v52  ;;  %v2857_v39 = vunpack.i.l.bf16 %v2856_v52 }
 0x522   : > { %v2851_v45 = vpop.permute.xlu0 %2850  ;;  %v1553_v3 = vsel %vm560_vm6, %v2843_v11, %v2858_v53  ;;  %v1552_v60 = vsel %vm560_vm6, %v2842_v16, %v2857_v39 }
 0x523   : > { %v4250_v55 = vpop.permute.xlu1 %2865  ;;  %v2853_v48 = vunpack.i.h.bf16 %v2851_v45  ;;  %v2852_v56 = vunpack.i.l.bf16 %v2851_v45  ;;  %v2446_v35 = vpack.c.bf16 %v1553_v3, %v1552_v60 }
 0x524   : > { %v2867_v23 = vunpack.i.l.bf16 %v4250_v55 }
 0x525   : > { %v1535_v6 = vsel %vm550_vm5, %v2838_v27, %v2853_v48  ;;  %v1534_v7 = vsel %vm550_vm5, %v2837_v58, %v2852_v56 }
 0x526   : > { %v2861_v57 = vpop.permute.xlu0 %2860  ;;  %v2442_v49 = vpack.c.bf16 %v1535_v6, %v1534_v7 }
 0x527   : > { %v2871_v63 = vpop.permute.xlu1 %2870  ;;  %v2863_v12 = vunpack.i.h.bf16 %v2861_v57  ;;  %v2862_v44 = vunpack.i.l.bf16 %v2861_v57 }
 0x528   : > { %v2873_v32 = vunpack.i.h.bf16 %v2871_v63  ;;  %v2872_v2 = vunpack.i.l.bf16 %v2871_v63 }
 0x529   : > { %v1571_v19 = vsel %vm570_vm7, %v2848_v22, %v2863_v12  ;;  %v1570_v14 = vsel %vm570_vm7, %v2847_v40, %v2862_v44 }
 0x52a   : > { %v1531_v5 = vsel %vm550_vm5, %v2873_v32, %v2838_v27  ;;  %v1530_v8 = vsel %vm550_vm5, %v2872_v2, %v2837_v58  ;;  %v2881_v13 = vpop.permute.xlu0 %2880  ;;  %v1532_v26 = vsel %vm550_vm5, %v2852_v56, %v2872_v2  ;;  %v1533_v30 = vsel %vm550_vm5, %v2853_v48, %v2873_v32 }
 0x52b   : > { %v2477_v28 = vpack.c.bf16 %v1531_v5, %v1530_v8  ;;  %v2876_v1 = vpop.permute.xlu1 %2875  ;;  %v2883_v42 = vunpack.i.h.bf16 %v2881_v13  ;;  %v2882_v29 = vunpack.i.l.bf16 %v2881_v13  ;;  %v2440_v20 = vpack.c.bf16 %v1533_v30, %v1532_v26 }
 0x52c   : > { %v2878_v15 = vunpack.i.h.bf16 %v2876_v1  ;;  %v2877_v36 = vunpack.i.l.bf16 %v2876_v1  ;;  %v2868_v48 = vunpack.i.h.bf16 %v4250_v55  ;;  %v2450_v56 = vpack.c.bf16 %v1571_v19, %v1570_v14 }
 0x52d   : > { %v1549_v21 = vsel %vm560_vm6, %v2883_v42, %v2843_v11  ;;  %v1548_v59 = vsel %vm560_vm6, %v2882_v29, %v2842_v16  ;;  %2478 = vmatpush1.bf16.msra.mxu1 %v2477_v28  ;;  %v1550_v25 = vsel %vm560_vm6, %v2857_v39, %v2882_v29  ;;  %v1551_v10 = vsel %vm560_vm6, %v2858_v53, %v2883_v42 }
 0x52e   : > { %v2480_v61 = vpack.c.bf16 %v1549_v21, %v1548_v59  ;;  %2441 = vmatprep.subr.bf16.mxu0 %v2440_v20  ;;  %v4276_v62 = vpop.permute.xlu0 %2885  ;;  %2479 = vmatprep.subr.bf16.mxu1 %v3295_v31  ;;  %v2444_v24 = vpack.c.bf16 %v1551_v10, %v1550_v25  ;;  %v1588_v27 = vsel %vm580_vm8, %v2877_v36, %v2867_v23 }
 0x52f   : > { %2443 = vmatpush1.bf16.msra.mxu0 %v2442_v49  ;;  %v2891_v34 = vpop.permute.xlu1 %2890  ;;  %v1589_v58 = vsel %vm580_vm8, %v2878_v15, %v2868_v48  ;;  %v2888_v7 = vunpack.i.h.bf16 %v4276_v62  ;;  %v2887_v60 = vunpack.i.l.bf16 %v4276_v62 }
 0x530   : > { %v2893_v43 = vunpack.i.h.bf16 %v2891_v34  ;;  %v2892_v37 = vunpack.i.l.bf16 %v2891_v34  ;;  %2445 = vmatprep.subr.bf16.mxu0 %v2444_v24  ;;  %v2454_v5 = vpack.c.bf16 %v1589_v58, %v1588_v27 }
 0x531   : > { %2481 = vmatpush1.bf16.msra.mxu1 %v2480_v61 }
 0x532   : > { %v1567_v4 = vsel %vm570_vm7, %v2893_v43, %v2848_v22  ;;  %v1566_v41 = vsel %vm570_vm7, %v2892_v37, %v2847_v40  ;;  %v2896_v0 = vpop.permute.xlu0 %2895  ;;  %2482 = vmatprep.subr.bf16.mxu1 %v3295_v31  ;;  %v1568_v18 = vsel %vm570_vm7, %v2862_v44, %v2892_v37  ;;  %v1569_v47 = vsel %vm570_vm7, %v2863_v12, %v2893_v43 }
 0x533   : > { %v2483_v17 = vpack.c.bf16 %v1567_v4, %v1566_v41  ;;  %2447 = vmatpush1.bf16.msra.mxu0 %v2446_v35  ;;  %v2906_v50 = vpop.permute.xlu1 %2905  ;;  %v2898_v52 = vunpack.i.h.bf16 %v2896_v0  ;;  %v2897_v45 = vunpack.i.l.bf16 %v2896_v0  ;;  %v2448_v53 = vpack.c.bf16 %v1569_v47, %v1568_v18 }
 0x534   : > { %v2908_v42 = vunpack.i.h.bf16 %v2906_v50  ;;  %v2907_v29 = vunpack.i.l.bf16 %v2906_v50 }
 0x535   : > { %v1585_v39 = vsel %vm580_vm8, %v2898_v52, %v2878_v15  ;;  %v1584_v57 = vsel %vm580_vm8, %v2897_v45, %v2877_v36  ;;  %2449 = vmatprep.subr.bf16.mxu0 %v2448_v53  ;;  %2484 = vmatpush1.bf16.msra.mxu1 %v2483_v17  ;;  %v1586_v11 = vsel %vm580_vm8, %v2867_v23, %v2897_v45 }
 0x536   : > { %v2486_v63 = vpack.c.bf16 %v1585_v39, %v1584_v57  ;;  %v2901_v55 = vpop.permute.xlu0 %2900  ;;  %2485 = vmatprep.subr.bf16.mxu1 %v3295_v31  ;;  %v1587_v16 = vsel %vm580_vm8, %v2868_v48, %v2898_v52 }
 0x537   : > { %2451 = vmatpush1.bf16.msra.mxu0 %v2450_v56  ;;  %v2911_v32 = vpop.permute.xlu1 %2910  ;;  %v2903_v2 = vunpack.i.h.bf16 %v2901_v55  ;;  %v2902_v3 = vunpack.i.l.bf16 %v2901_v55  ;;  %v2452_v6 = vpack.c.bf16 %v1587_v16, %v1586_v11 }
 0x538   : > { %v2913_v8 = vunpack.i.h.bf16 %v2911_v32  ;;  %v2912_v13 = vunpack.i.l.bf16 %v2911_v32 }
 0x539   : > { %2453 = vmatprep.subr.bf16.mxu0 %v2452_v6  ;;  %2487 = vmatpush1.bf16.msra.mxu1 %v2486_v63  ;;  %v1606_v26 = vsel %vm590_vm9, %v2902_v3, %v2887_v60  ;;  %v1607_v28 = vsel %vm590_vm9, %v2903_v2, %v2888_v7 }
 0x53a   : > { %v2916_v1 = vpop.permute.xlu0 %2915  ;;  %2488 = vmatprep.subr.bf16.mxu1 %v3295_v31  ;;  %v1624_v44 = vsel %vm600_vm10, %v2912_v13, %v2907_v29  ;;  %v1625_v20 = vsel %vm600_vm10, %v2913_v8, %v2908_v42  ;;  %v2492_v21 = vpack.c.bf16 %v1607_v28, %v1606_v26 }
 0x53b   : > { %2455 = vmatpush1.bf16.msra.mxu0 %v2454_v5  ;;  %v2921_v30 = vpop.permute.xlu1 %2920  ;;  %v2495_v43 = vpack.c.bf16 %v1625_v20, %v1624_v44  ;;  %v2918_v37 = vunpack.i.h.bf16 %v2916_v1  ;;  %v2917_v19 = vunpack.i.l.bf16 %v2916_v1  ;;  %v2206_v1 = vld [vmem:[%s3673_s14 + $0x20] sm:$0xff] }
 0x53c   : > { %v2923_v49 = vunpack.i.h.bf16 %v2921_v30  ;;  %v2922_v12 = vunpack.i.l.bf16 %v2921_v30  ;;  %2457 = vmatprep.subr.bf16.mxu0 %v4219_v9 }
 0x53d   : > { %2490 = vmatpush1.bf16.msra.mxu1 %v4215_v54 }
 0x53e   : > { %v1604_v59 = vsel %vm590_vm9, %v2887_v60, %v2922_v12  ;;  %v1605_v25 = vsel %vm590_vm9, %v2888_v7, %v2923_v49  ;;  %v2926_v10 = vpop.permute.xlu0 %2925  ;;  %2491 = vmatprep.subr.bf16.mxu1 %v3295_v31  ;;  %v1602_v9 = vsel %vm590_vm9, %v2922_v12, %v2902_v3  ;;  %v1603_v61 = vsel %vm590_vm9, %v2923_v49, %v2903_v2 }
 0x53f   : > { %v2462_v62 = vpack.c.bf16 %v1605_v25, %v1604_v59  ;;  %2459 = vmatpush1.bf16.msra.mxu0 %v4221_v38  ;;  %v2936_v22 = vpop.permute.xlu1 %2935  ;;  %v2928_v54 = vunpack.i.h.bf16 %v2926_v10  ;;  %v2927_v40 = vunpack.i.l.bf16 %v2926_v10  ;;  %v2460_v34 = vpack.c.bf16 %v1603_v61, %v1602_v9 }
 0x540   : > { %v2938_v17 = vunpack.i.h.bf16 %v2936_v22  ;;  %v2937_v50 = vunpack.i.l.bf16 %v2936_v22 }
 0x541   : > { %v1623_v24 = vsel %vm600_vm10, %v2908_v42, %v2928_v54  ;;  %v1622_v35 = vsel %vm600_vm10, %v2907_v29, %v2927_v40  ;;  %2461 = vmatprep.subr.bf16.mxu0 %v2460_v34  ;;  %2493 = vmatpush1.bf16.msra.mxu1 %v2492_v21  ;;  %v1620_v23 = vsel %vm600_vm10, %v2927_v40, %v2912_v13  ;;  %v2209_v42 = vld [vmem:[%s3673_s14 + $0x38] sm:$0xff] }
 0x542   : > { %v2931_v14 = vpop.permute.xlu0 %2930  ;;  %2494 = vmatprep.subr.bf16.mxu1 %v3295_v31  ;;  %v1621_v38 = vsel %vm600_vm10, %v2928_v54, %v2913_v8  ;;  %v2466_v15 = vpack.c.bf16 %v1623_v24, %v1622_v35 }
 0x543   : > { %2463 = vmatpush1.bf16.msra.mxu0 %v2462_v62  ;;  %v2941_v36 = vpop.permute.xlu1 %2940  ;;  %v2933_v4 = vunpack.i.h.bf16 %v2931_v14  ;;  %v2932_v41 = vunpack.i.l.bf16 %v2931_v14  ;;  %v2464_v0 = vpack.c.bf16 %v1621_v38, %v1620_v23 }
 0x544   : > { %v2943_v18 = vunpack.i.h.bf16 %v2941_v36  ;;  %v2942_v47 = vunpack.i.l.bf16 %v2941_v36 }
 0x545   : > { %v1642_v52 = vsel %vm610_vm11, %v2932_v41, %v2917_v19  ;;  %v1643_v45 = vsel %vm610_vm11, %v2933_v4, %v2918_v37  ;;  %2465 = vmatprep.subr.bf16.mxu0 %v2464_v0  ;;  %2496 = vmatpush1.bf16.msra.mxu1 %v2495_v43 }
 0x546   : > { %v1640_v53 = vsel %vm610_vm11, %v2917_v19, %v2942_v47  ;;  %v1641_v48 = vsel %vm610_vm11, %v2918_v37, %v2943_v18  ;;  %v2498_v56 = vpack.c.bf16 %v1643_v45, %v1642_v52  ;;  %v2946_v39 = vpop.permute.xlu0 %2945  ;;  %2497 = vmatprep.subr.bf16.mxu1 %v3295_v31  ;;  %v1638_v57 = vsel %vm610_vm11, %v2942_v47, %v2932_v41 }
 0x547   : > { %v2470_v11 = vpack.c.bf16 %v1641_v48, %v1640_v53  ;;  %2467 = vmatpush1.bf16.msra.mxu0 %v2466_v15  ;;  %v2951_v27 = vpop.permute.xlu1 %2950  ;;  %v2948_v58 = vunpack.i.h.bf16 %v2946_v39  ;;  %v2947_v63 = vunpack.i.l.bf16 %v2946_v39  ;;  %v1639_v55 = vsel %vm610_vm11, %v2943_v18, %v2933_v4 }
 0x548   : > { %v2953_v16 = vunpack.i.h.bf16 %v2951_v27  ;;  %v2952_v32 = vunpack.i.l.bf16 %v2951_v27  ;;  %v2468_v2 = vpack.c.bf16 %v1639_v55, %v1638_v57 }
 0x549   : > { %v1659_v3 = vsel %vm620_vm12, %v2938_v17, %v2948_v58  ;;  %v1658_v6 = vsel %vm620_vm12, %v2937_v50, %v2947_v63  ;;  %2499 = vmatpush1.bf16.msra.mxu1 %v2498_v56 }
 0x54a   : > { %v1660_v7 = vsel %vm620_vm12, %v2952_v32, %v2937_v50  ;;  %v1661_v60 = vsel %vm620_vm12, %v2953_v16, %v2938_v17  ;;  %2469 = vmatprep.subr.bf16.mxu0 %v2468_v2  ;;  %2500 = vmatprep.subr.bf16.mxu1 %v3295_v31  ;;  %v2474_v8 = vpack.c.bf16 %v1659_v3, %v1658_v6  ;;  %v2208_v31 = vld [vmem:[%s3673_s14 + $0x30] sm:$0xff] }
 0x54b   : > { %v2501_v5 = vpack.c.bf16 %v1661_v60, %v1660_v7  ;;  %2471 = vmatpush1.bf16.msra.mxu0 %v2470_v11  ;;  %v1656_v13 = vsel %vm620_vm12, %v2947_v63, %v2952_v32  ;;  %v1657_v26 = vsel %vm620_vm12, %v2948_v58, %v2953_v16 }
 0x54c   : > { %v2472_v28 = vpack.c.bf16 %v1657_v26, %v1656_v13 }
 0x54d   : > { %2502 = vmatpush1.bf16.msra.mxu1 %v2501_v5 }
 0x54e   : > { %2473 = vmatprep.subr.bf16.mxu0 %v2472_v28 }
 0x54f   : > { %2475 = vmatpush1.bf16.msra.mxu0 %v2474_v8 }
 0x550   : > { %1962 = vmatmul.mubr.f32.vlgmr.msra.gmra.mrb[12].mxu1 %v2206_v1 }
 0x551   : > { %2217 = vmatprep.mubr.msk.f32.mxu1 %vm1096_vm14, %v2209_v42 }
 0x552   : > { %1885 = vmatmul.mubr.f32.vlgmr.msra.gmra.mrb[12].mxu0 %v2206_v1 }
 0x553   : > { %2215 = vmatprep.mubr.msk.f32.mxu0 %vm1096_vm14, %v2209_v42 }
 0x554   : > { %1967 = vmatmul.mubr.f32.gmra.mrb[14].mxu1 %v2208_v31 }
 0x556   : > { %1891 = vmatmul.mubr.f32.gmra.mrb[14].mxu0 %v2208_v31 }
 0x623   : > { %v1963_v46 = vpop.f32.mrb[12].mxu1 }
 0x624   : > { %v1964_v29 = vadd.f32 %v1963_v46, %v4248_v33  ;;  %v1965_v30 = vpop.f32.mrb[13].mxu1 }
 0x625   : > { %v1886_v49 = vpop.f32.mrb[12].mxu0 }
 0x626   : > { %2220 = vst [vmem:[%s4199_s24 + $0x40] sm:$0xff] %v1964_v29  ;;  %2218 = vst [vmem:[%s4199_s24 + $0x30] sm:$0xff] %v1886_v49  ;;  %v1888_v12 = vpop.f32.mrb[13].mxu0 }
 0x627   : > { %2219 = vst [vmem:[%s4199_s24 + $0x38] sm:$0xff] %v1888_v12  ;;  %v1968_v44 = vpop.f32.mrb[14].mxu1 }
 0x628   : > { %v1969_v20 = vadd.f32 %v4246_v51, %v1968_v44  ;;  %v1970_v21 = vpop.f32.mrb[15].mxu1 }
 0x629   : > { %v1892_v33 = vpop.f32.mrb[14].mxu0 }
 0x62a   : > { %2223 = vst [vmem:[%s4199_s24 + $0x58] sm:$0xff] %v1969_v20  ;;  %2221 = vst [vmem:[%s4199_s24 + $0x48] sm:$0xff] %v1892_v33  ;;  %v1894_v59 = vpop.f32.mrb[15].mxu0 }
 0x62b   : > { %2222 = vst [vmem:[%s4199_s24 + $0x50] sm:$0xff] %v1894_v59 }
 0x62c   : > { %3200 = shalt.err (!%p3197_p10)
}
 0x62d   : > { %s3201_s14 = scalar_lea.hbm %s4380_s13, 1536  ;;  %s3205_s1 = scalar_lea.hbm %s4499_s21, 3072 }
 0x62e   : > { %p3202_p2 = scmp.ne.s32.totalorder %s4380_s13, %s3201_s14  ;;  %p3206_p3 = scmp.lt.u32.totalorder %s4380_s13, %s4499_s21 }
 0x62f   : > { %p3207_p5 = scmp.lt.u32.totalorder %s3205_s1, %s3201_s14  ;;  %p3209_p0 = scmp.lt.u32.totalorder %s3201_s14, %s4380_s13 }
 0x630   : > { %p3203_p1 = pnand %p3202_p2, %p4500_p11 }
 0x631   : > { %p3208_p8 = por %p3207_p5, %p3206_p3 }
 0x632   : > { %p3204_p6 = pneg %p3203_p1 }
 0x633   : > { %p3210_p13 = por %p3209_p0, %p3208_p8 }
 0x635   : > { %p3211_p7 = pnand %p3210_p13, %p3204_p6 }
 0x637   : > { %3214 = shalt.err (!%p3211_p7)
}
 0x638   : > { %s3297_s3 = smov 384   ;;  %s3298_s12 = smov 24  }
 0x639   : > { %2542 = dma.vmem_to_hbm [thread:$0]  (%p4500_p11), %s4382_s17, 1536, %s4380_s13, %s1980_s9, %s3297_s3, %s3297_s3, %s3298_s12  }
 0x63a PF: > { %s4501_s22 = sld [smem:[#allocation23_spill]]  ;;  %s4502_s20 = sld [smem:[#allocation25_spill]] }
 0x63b   : > { %p4504_p12 = scmp.ge.s32.totalorder %s3269_s30, 2 }
 0x640   : > { %s2009_s24 = sand.u32 1, %s4501_s22   ;;  %p4503_p9 = scmp.ne.s32.totalorder %s4502_s20, 0 }
 0x641   : > { %s2010_s5 = scalar_lea.sflag [#allocation4], %s2009_s24 }
 0x642   : > { %p2571_p4 = pnand %p4504_p12, %p4503_p9 }
 0x644   : > { %3252 = dma.done.wait (!%p2571_p4), %s2010_s5, 1536  }
 0x645   : > { %3254 = vsyncadd (!%p2571_p4), %s2010_s5, 4294965760  ;;  %s4505_s30 = sld [smem:[#allocation26_spill]]  ;;  %s4506_s16 = sld [smem:[#allocation24_spill]] }
 0x646   : > { %s4507_s29 = sld [smem:[#allocation28_spill]]  ;;  %s4508_s27 = smov %s3261_s28 }
 0x64b   : > { %p27_p10 = scmp.ge.s32.totalorder %s4505_s30, 4   ;;  %s4509_s28 = smov %s4506_s16 }
 0x64d   :  { %29 = sbr.rel (!%p27_p10) target bundleno = 15 (0xf), region = 145 }
 0x654   :  { %2015 = vsyncpa [#allocation3], 1 }
 0x655   :  { %2017 = vsyncpa [#allocation3 + $0x1], 1 }
 0x656   :  { %2018 = vsyncpa [#allocation6], 1 }
 0x657   :  { %2020 = vsyncpa [#allocation6 + $0x1], 1 }
 0x658   :  { %2021 = vsyncpa [#allocation9], 1 }
 0x659   :  { %2022 = vsyncpa [#allocation12], 1 }
 0x65a   :  { %2023 = vsyncpa [#allocation15], 1 }
 0x65b   :  { %2024 = vsyncpa [#allocation4], 1 }
 0x65c   :  { %2026 = vsyncpa [#allocation4 + $0x1], 1 }

</bundles_post_ra>
